<compile_context>
chip_gen: v7x
topology: tpu7x:2x2x1
jax: 0.10.0
libtpu: 0.0.40
codegen_flags: <defaults>
</compile_context>

<pallas_src>
import jax
import jax.numpy as jnp
from jax.experimental import pallas as pl
from jax.experimental.pallas import tpu as pltpu

_SQRT_HALF = 0.7071067811865476


def _round_up(x, m):
    return ((x + m - 1) // m) * m


def _vmem_capacity_bytes():
    try:
        return int(pltpu.get_tpu_info().vmem_capacity_bytes)
    except Exception:
        return 64 << 20  # conservative fallback: v7x per-TensorCore VMEM


def _gelu_erf(h):
    # Exact erf GELU in f32.
    # TODO(synk): if bundle dumps ever show the VALU slot saturating (small
    # hidden), switch to tanh-approx GELU (EUP slot) if numerics allow.
    return 0.5 * h * (1.0 + jax.lax.erf(h * jnp.float32(_SQRT_HALF)))


def _mlp_kernel_resident(x_ref, w1_ref, b1_ref, w2_ref, b2_ref, o_ref):
    """Both weight matrices VMEM-resident: single fused step, no scratch."""
    h = jnp.dot(x_ref[...], w1_ref[...], preferred_element_type=jnp.float32)
    a = _gelu_erf(h + b1_ref[...])
    out = jnp.dot(a.astype(w2_ref.dtype), w2_ref[...],
                  preferred_element_type=jnp.float32)
    o_ref[...] = (out + b2_ref[...]).astype(o_ref.dtype)


def _mlp_kernel_streamed(x_ref, w1_ref, b1_ref, w2_ref, b2_ref, o_ref, acc_ref):
    """Intermediate dim split into n_k >= 2 tiles; f32 VMEM accumulator."""
    k = pl.program_id(1)
    last = pl.num_programs(1) - 1

    h = jnp.dot(x_ref[...], w1_ref[...], preferred_element_type=jnp.float32)
    a = _gelu_erf(h + b1_ref[...])
    part = jnp.dot(a.astype(w2_ref.dtype), w2_ref[...],
                   preferred_element_type=jnp.float32)

    @pl.when(k == 0)
    def _():
        acc_ref[...] = part                       # first step: plain write

    @pl.when(jnp.logical_and(k > 0, k < last))
    def _():
        acc_ref[...] += part                      # middle steps: accumulate

    @pl.when(k == last)
    def _():                                      # last step: fuse into output
        o_ref[...] = (acc_ref[...] + part + b2_ref[...]).astype(o_ref.dtype)


def prepare_mlp_params(w_fc1, b_fc1, w_fc2, b_fc2, compute_dtype=jnp.bfloat16):
    """Transpose PyTorch (out,in) weights to (in,out) and cast ONCE (load time).

    Calling this per forward would re-materialize ~100 MiB of weights in HBM
    for real CogVLM sizes; cache the result instead.
    """
    return dict(
        w1t=jnp.asarray(w_fc1).T.astype(compute_dtype),    # (hidden, inter)
        b1=jnp.asarray(b_fc1).astype(jnp.float32),          # (inter,)
        w2t=jnp.asarray(w_fc2).T.astype(compute_dtype),     # (inter, hidden)
        b2=jnp.asarray(b_fc2).astype(jnp.float32),           # (hidden,)
    )


def mlp_forward(x, params, *, tm=None, max_weight_vmem_bytes=None,
                weight_buffers=None):
    """x: (B, S, hidden). params: output of prepare_mlp_params()."""
    w1t, b1, w2t, b2 = params["w1t"], params["b1"], params["w2t"], params["b2"]
    hidden, inter = w1t.shape
    assert w2t.shape == (inter, hidden)
    compute_dtype = w1t.dtype
    out_dtype = x.dtype
    wbytes = jnp.dtype(compute_dtype).itemsize
    out_bytes = jnp.dtype(out_dtype).itemsize

    B, S, _ = x.shape
    M = B * S

    # --- Generation-aware VMEM budgets (v5e/v6e: 128 MiB, v7x: 64 MiB/TC).
    vmem_cap = _vmem_capacity_bytes()
    vmem_clamp = int(0.85 * vmem_cap)
    if max_weight_vmem_bytes is None:
        frac = 0.375 if vmem_cap >= (100 << 20) else 0.25
        max_weight_vmem_bytes = int(vmem_cap * frac)

    total_w_bytes = 2 * hidden * inter * wbytes
    streaming = total_w_bytes > max_weight_vmem_bytes

    # --- Row tiling: big tiles when weights are streamed (cuts weight
    # re-streaming, keeps each k-step MXU-bound); pad ragged M.
    if tm is None:
        tm = 512 if streaming else 256
    Mp128 = _round_up(M, 128)
    tm = max(128, (min(tm, Mp128) // 128) * 128)
    # Megacore: ensure >= 2 row tiles whenever there is enough work.
    if Mp128 >= 256 and _round_up(M, tm) // tm < 2:
        tm = max(128, _round_up(-(-Mp128 // 2), 128))

    # --- Intermediate tiling: resident if it fits the weight budget,
    # otherwise stream the intermediate dim as a reduction grid axis.
    if streaming:
        n_chunks = -(-total_w_bytes // max_weight_vmem_bytes)
        tk = _round_up(-(-inter // n_chunks), 128)
    else:
        tk = inter

    n_weight_bufs = 2 if weight_buffers is None else max(2, int(weight_buffers))

    def footprint(tm_, tk_, n_k_):
        per_step = (tm_ * hidden * wbytes        # x block
                    + hidden * tk_ * wbytes      # W1 block
                    + tk_ * 4                    # b1 block
                    + tk_ * hidden * wbytes      # W2 block
                    + hidden * 4                 # b2 block
                    + tm_ * hidden * out_bytes)  # out block
        acc = tm_ * hidden * 4 if n_k_ > 1 else 0
        inter_scratch = tm_ * tk_ * 6            # h (f32) + GELU out (bf16)
        weight_extra = (n_weight_bufs - 2) * 2 * hidden * tk_ * wbytes
        return acc + 2 * per_step + inter_scratch + weight_extra

    def limit_bytes(tm_, tk_, n_k_):
        return int(footprint(tm_, tk_, n_k_) * 1.3) + (4 << 20)

    # Shrink tk, then tm, until the estimated footprint fits physical VMEM.
    while True:
        n_k_est = max(1, -(-inter // tk))
        if limit_bytes(tm, tk, n_k_est) <= vmem_clamp:
            break
        if tk > 512:
            tk = max(512, _round_up(tk // 2, 128))
        elif tm > 128:
            tm = max(128, (tm // 2 // 128) * 128)
        else:
            break

    interp = _round_up(inter, tk)
    n_k = interp // tk
    Mp = _round_up(M, tm)

    # --- Inputs / weight padding (zero-padded lanes contribute 0 through
    # GELU(b1=0)*W2(row=0), padded rows are sliced off at the end).
    x2d = x.reshape(M, hidden).astype(compute_dtype)
    if Mp != M:
        x2d = jnp.pad(x2d, ((0, Mp - M), (0, 0)))

    b1r = b1.reshape(1, inter)
    b2r = b2.reshape(1, hidden)
    w1p, w2p = w1t, w2t
    if interp != inter:
        pad = interp - inter
        w1p = jnp.pad(w1p, ((0, 0), (0, pad)))
        b1r = jnp.pad(b1r, ((0, 0), (0, pad)))
        w2p = jnp.pad(w2p, ((0, pad), (0, 0)))

    vmem_limit = int(min(max(limit_bytes(tm, tk, n_k), 16 << 20), vmem_clamp))

    # Weights re-streamed once per row tile when the intermediate dim is split.
    weight_passes = (Mp // tm) if n_k > 1 else 1
    cost = pl.CostEstimate(
        flops=4 * Mp * hidden * interp,                   # two matmuls
        transcendentals=Mp * interp,                      # erf
        bytes_accessed=(Mp * hidden * (wbytes + out_bytes)
                        + weight_passes * 2 * hidden * interp * wbytes
                        + 4 * (interp + hidden)),
    )

    if n_k == 1:
        grid = (Mp // tm,)
        in_specs = [
            pl.BlockSpec((tm, hidden), lambda i: (i, 0)),       # x rows
            pl.BlockSpec((hidden, interp), lambda i: (0, 0)),   # W1 (resident)
            pl.BlockSpec((1, interp), lambda i: (0, 0)),        # b1
            pl.BlockSpec((interp, hidden), lambda i: (0, 0)),   # W2 (resident)
            pl.BlockSpec((1, hidden), lambda i: (0, 0)),        # b2
        ]
        out_specs = pl.BlockSpec((tm, hidden), lambda i: (i, 0))
        scratch = []
        kernel = _mlp_kernel_resident
        dims = ("parallel",)
    else:
        wspec_kwargs = {}
        if n_weight_bufs > 2:
            # Deeper weight pipelining (useful on v5e if DMA is still exposed).
            wspec_kwargs = dict(pipeline_mode=pl.Buffered(n_weight_bufs))
        grid = (Mp // tm, n_k)
        in_specs = [
            pl.BlockSpec((tm, hidden), lambda i, k: (i, 0)),                  # x rows
            pl.BlockSpec((hidden, tk), lambda i, k: (0, k), **wspec_kwargs),  # W1 tile
            pl.BlockSpec((1, tk), lambda i, k: (0, k)),                       # b1 tile
            pl.BlockSpec((tk, hidden), lambda i, k: (k, 0), **wspec_kwargs),  # W2 tile
            pl.BlockSpec((1, hidden), lambda i, k: (0, 0)),                   # b2
        ]
        out_specs = pl.BlockSpec((tm, hidden), lambda i, k: (i, 0))
        scratch = [pltpu.VMEM((tm, hidden), jnp.float32)]
        kernel = _mlp_kernel_streamed
        dims = ("parallel", "arbitrary")

    out2d = pl.pallas_call(
        kernel,
        out_shape=jax.ShapeDtypeStruct((Mp, hidden), out_dtype),
        grid_spec=pltpu.PrefetchScalarGridSpec(
            num_scalar_prefetch=0,
            grid=grid,
            in_specs=in_specs,
            out_specs=out_specs,
            scratch_shapes=scratch,
        ),
        compiler_params=pltpu.CompilerParams(
            dimension_semantics=dims,
            vmem_limit_bytes=vmem_limit,
        ),
        cost_estimate=cost,
    )(x2d, w1p, b1r, w2p, b2r)

    return out2d[:M].reshape(B, S, hidden)


def mlp_forward_torch_layout(x, w_fc1, b_fc1, w_fc2, b_fc2, **kw):
    # Convenience path: prefer prepare_mlp_params() once at model-load time.
    return mlp_forward(x, prepare_mlp_params(w_fc1, b_fc1, w_fc2, b_fc2), **kw)


def mlp_reference(x, w_fc1, b_fc1, w_fc2, b_fc2):
    h = jnp.einsum("bsh,ih->bsi", x, w_fc1) + b_fc1
    a = 0.5 * h * (1.0 + jax.lax.erf(h * _SQRT_HALF))
    return jnp.einsum("bsi,hi->bsh", a, w_fc2) + b_fc2


if __name__ == "__main__":
    # Small synthetic config: hidden_size=256, intermediate_size=512.
    # S=500 gives a ragged token count (M=1000) to exercise row padding.
    B, S = 2, 500
    hidden, intermediate = 256, 512

    key = jax.random.PRNGKey(0)
    kx, k1, k2, k3, k4 = jax.random.split(key, 5)
    x = jax.random.normal(kx, (B, S, hidden), dtype=jnp.float32)
    w_fc1 = jax.random.normal(k1, (intermediate, hidden), jnp.float32) * 0.02
    b_fc1 = jax.random.normal(k2, (intermediate,), jnp.float32) * 0.02
    w_fc2 = jax.random.normal(k3, (hidden, intermediate), jnp.float32) * 0.02
    b_fc2 = jax.random.normal(k4, (hidden,), jnp.float32) * 0.02

    ref = mlp_reference(x, w_fc1, b_fc1, w_fc2, b_fc2)

    # Weight prep happens ONCE (hoisted out of the per-call path).
    params = prepare_mlp_params(w_fc1, b_fc1, w_fc2, b_fc2)

    # Path 1: weights fully VMEM-resident (single fused step, no scratch).
    out = jax.block_until_ready(mlp_forward(x, params))
    assert out.shape == (B, S, hidden)
    assert jnp.allclose(out, ref, atol=2e-2, rtol=2e-2), "resident path mismatch"

    # Path 2: force intermediate-dim streaming + f32 accumulation
    # (exercises the n_k > 1 reduction kernel used for real CogVLM sizes).
    out_stream = jax.block_until_ready(
        mlp_forward(x, params, max_weight_vmem_bytes=128 * 1024))
    assert jnp.allclose(out_stream, ref, atol=2e-2, rtol=2e-2), "streamed path mismatch"

    print("KERNEL_OK")
</pallas_src>

<mosaic_0001>
module attributes {stable_mosaic.version = 11 : i64} {
  func.func @_mlp_kernel_resident(%arg0: i32, %arg1: memref<256x256xbf16, #tpu.memory_space<vmem>>, %arg2: memref<256x512xbf16, #tpu.memory_space<vmem>>, %arg3: memref<1x512xf32, #tpu.memory_space<vmem>>, %arg4: memref<512x256xbf16, #tpu.memory_space<vmem>>, %arg5: memref<1x256xf32, #tpu.memory_space<vmem>>, %arg6: memref<256x256xf32, #tpu.memory_space<vmem>>) attributes {dimension_semantics = [#tpu.dimension_semantics<parallel>], iteration_bounds = array<i64: 4>, scalar_prefetch = 0 : i64, scratch_operands = 0 : i64, tpu.core_type = #tpu.core_type<tc>, window_params = [{transform_indices = @transform_0, window_bounds = array<i64: 256, 256>}, {pipeline_mode = #tpu.pipeline_mode<synchronous>, transform_indices = @transform_1, window_bounds = array<i64: 256, 512>}, {pipeline_mode = #tpu.pipeline_mode<synchronous>, transform_indices = @transform_2, window_bounds = array<i64: 1, 512>}, {pipeline_mode = #tpu.pipeline_mode<synchronous>, transform_indices = @transform_3, window_bounds = array<i64: 512, 256>}, {pipeline_mode = #tpu.pipeline_mode<synchronous>, transform_indices = @transform_4, window_bounds = array<i64: 1, 256>}, {transform_indices = @transform_5, window_bounds = array<i64: 256, 256>}]} {
    %c0 = arith.constant 0 : index
    %c0_0 = arith.constant 0 : index
    %0 = vector.load %arg1[%c0, %c0_0] : memref<256x256xbf16, #tpu.memory_space<vmem>>, vector<256x256xbf16>
    %c0_1 = arith.constant 0 : index
    %c0_2 = arith.constant 0 : index
    %1 = vector.load %arg2[%c0_1, %c0_2] : memref<256x512xbf16, #tpu.memory_space<vmem>>, vector<256x512xbf16>
    %cst = arith.constant dense<0.000000e+00> : vector<256x512xf32>
    %2 = tpu.matmul %0, %1, %cst {dimension_numbers = #tpu.dot_dimension_numbers<[1], [0], [0], [1], [0, 0, 1, 1], [], []>} : vector<256x256xbf16>, vector<256x512xbf16>, vector<256x512xf32> -> vector<256x512xf32>
    %c0_3 = arith.constant 0 : index
    %c0_4 = arith.constant 0 : index
    %3 = vector.load %arg3[%c0_3, %c0_4] : memref<1x512xf32, #tpu.memory_space<vmem>>, vector<1x512xf32>
    %4 = vector.broadcast %3 : vector<1x512xf32> to vector<256x512xf32>
    %5 = arith.addf %2, %4 : vector<256x512xf32>
    %cst_5 = arith.constant 5.000000e-01 : f32
    %6 = vector.broadcast %cst_5 : f32 to vector<256x512xf32>
    %7 = arith.mulf %6, %5 : vector<256x512xf32>
    %cst_6 = arith.constant 0.707106769 : f32
    %8 = vector.broadcast %cst_6 : f32 to vector<256x512xf32>
    %9 = arith.mulf %5, %8 : vector<256x512xf32>
    %10 = math.erf %9 : vector<256x512xf32>
    %cst_7 = arith.constant 1.000000e+00 : f32
    %11 = vector.broadcast %cst_7 : f32 to vector<256x512xf32>
    %12 = arith.addf %11, %10 : vector<256x512xf32>
    %13 = arith.mulf %7, %12 : vector<256x512xf32>
    %14 = arith.truncf %13 : vector<256x512xf32> to vector<256x512xbf16>
    %c0_8 = arith.constant 0 : index
    %c0_9 = arith.constant 0 : index
    %15 = vector.load %arg4[%c0_8, %c0_9] : memref<512x256xbf16, #tpu.memory_space<vmem>>, vector<512x256xbf16>
    %cst_10 = arith.constant dense<0.000000e+00> : vector<256x256xf32>
    %16 = tpu.matmul %14, %15, %cst_10 {dimension_numbers = #tpu.dot_dimension_numbers<[1], [0], [0], [1], [0, 0, 1, 1], [], []>} : vector<256x512xbf16>, vector<512x256xbf16>, vector<256x256xf32> -> vector<256x256xf32>
    %c0_11 = arith.constant 0 : index
    %c0_12 = arith.constant 0 : index
    %17 = vector.load %arg5[%c0_11, %c0_12] : memref<1x256xf32, #tpu.memory_space<vmem>>, vector<1x256xf32>
    %18 = vector.broadcast %17 : vector<1x256xf32> to vector<256x256xf32>
    %19 = arith.addf %16, %18 : vector<256x256xf32>
    %c0_13 = arith.constant 0 : index
    %c0_14 = arith.constant 0 : index
    %20 = vector.load %arg6[%c0_13, %c0_14] : memref<256x256xf32, #tpu.memory_space<vmem>>, vector<256x256xf32>
    tpu.vector_store %arg6[%c0_13, %c0_14], %19 {strides = array<i32>} : memref<256x256xf32, #tpu.memory_space<vmem>>, vector<256x256xf32>,
    return
  }
  func.func @transform_0(%arg0: i32) -> (i32, i32) {
    %c0_i32 = arith.constant 0 : i32
    %c0_i32_0 = arith.constant 0 : i32
    return %arg0, %c0_i32 : i32, i32
  }
  func.func @transform_1(%arg0: i32) -> (i32, i32) {
    %c0_i32 = arith.constant 0 : i32
    %c0_i32_0 = arith.constant 0 : i32
    %c0_i32_1 = arith.constant 0 : i32
    return %c0_i32, %c0_i32_0 : i32, i32
  }
  func.func @transform_2(%arg0: i32) -> (i32, i32) {
    %c0_i32 = arith.constant 0 : i32
    %c0_i32_0 = arith.constant 0 : i32
    %c0_i32_1 = arith.constant 0 : i32
    return %c0_i32, %c0_i32_0 : i32, i32
  }
  func.func @transform_3(%arg0: i32) -> (i32, i32) {
    %c0_i32 = arith.constant 0 : i32
    %c0_i32_0 = arith.constant 0 : i32
    %c0_i32_1 = arith.constant 0 : i32
    return %c0_i32, %c0_i32_0 : i32, i32
  }
  func.func @transform_4(%arg0: i32) -> (i32, i32) {
    %c0_i32 = arith.constant 0 : i32
    %c0_i32_0 = arith.constant 0 : i32
    %c0_i32_1 = arith.constant 0 : i32
    return %c0_i32, %c0_i32_0 : i32, i32
  }
  func.func @transform_5(%arg0: i32) -> (i32, i32) {
    %c0_i32 = arith.constant 0 : i32
    %c0_i32_0 = arith.constant 0 : i32
    return %arg0, %c0_i32 : i32, i32
  }
}

</mosaic_0001>

<bundles_post_ra>
// kernel: tpu_custom_call.1
= control target key start
LH: loop header
LB: loop body
LE: loop exit
PB: predicated region body
PF: predicated region fallthrough
CT: control target
= control target key end

     0   :  { %10 = vsyncpa [#allocation3], 0  ;;  %s5148_s0 = inlined_call_operand.hbm [shape: bf16[1024,256], index: 0, kind: input, shape index: {}]   ;;  %s5149_s1 = inlined_call_operand.hbm [shape: bf16[256,512], index: 1, kind: input, shape index: {}]   ;;  %s5150_s2 = inlined_call_operand.vmem [shape: f32[1,512], index: 2, kind: input, shape index: {}]   ;;  %s5151_s3 = inlined_call_operand.hbm [shape: bf16[512,256], index: 3, kind: input, shape index: {}]   ;;  %s5152_s4 = inlined_call_operand.vmem [shape: f32[1,256], index: 4, kind: input, shape index: {}]   ;;  %s5153_s5 = inlined_call_operand.hbm [shape: f32[1024,256], index: 5, kind: output, shape index: {}]  }
   0x1   :  { %12 = vsyncpa [#allocation3 + $0x1], 0 }
   0x2   :  { %13 = vsyncpa [#allocation6], 0 }
   0x3   :  { %14 = vsyncpa [#allocation4], 0 }
   0x4   :  { %16 = vsyncpa [#allocation4 + $0x1], 0  ;;  %s3996_s18 = smov 0   ;;  %s3998_s19 = smov 0  }
   0x5   :  { %s4000_s20 = smov 0   ;;  %s4002_s21 = smov 0  }
   0x6 LB: > { %s4017_s22 = sadd.s32 4294967295, %s3954_s21   ;;  %s2916_s23 = sadd.s32 4294967294, %s3954_s21   ;;  %s3954_s21 = sphi %s4002_s21, %s5172_s21   ;;  %s3950_s20 = sphi %s4000_s20, %s5171_s20   ;;  %s3946_s19 = sphi %s3998_s19, %s5170_s19   ;;  %s3942_s18 = sphi %s3996_s18, %s5169_s18  }
   0x7   : > { %p42_p0 = scmp.ne.s32.totalorder %s3946_s19, %s3942_s18  ;;  %p5154_p1 = scmp.eq.s32.totalorder %s4017_s22, 0 }
   0x8   : > { %p156_p3 = scmp.eq.s32.totalorder %s2916_s23, 3  ;;  %p2917_p5 = scmp.ge.s32.totalorder %s3954_s21, 1 }
   0x9   : > { %p4026_p4 = por %p5154_p1, %p42_p0  ;;  %p163_p7 = scmp.lt.s32.totalorder %s3954_s21, 5 }
   0xa   : > { %p4031_p6 = por %p156_p3, %p42_p0  ;;  %s3956_s27 = smov [#allocation5]  }
   0xb   : > { %s5157_s24 = scalar_select %p4026_p4, 1, 0 }
   0xc   : > { %s5158_s25 = scalar_select %p4031_p6, 1, 0 }
   0xd   : > { %p4036_p8 = pnand %p2917_p5, %p163_p7  ;;  %s175_s28 = sshll.u32 %s3956_s27, 4  ;;  %s176_s28 = int_to_ptr.vmem [resolvable:$true] %s175_s28 }
   0xe   : > { %s3957_s30 = smov [#allocation7]   ;;  %s3798_s9 = scalar_lea.hbm %s5149_s1, 8192 }
   0xf   : > { %s5159_s26 = scalar_select %p4036_p8, 1, 0 }
  0x10   : > { %p3240_p9 = pneg %p4036_p8  ;;  %s191_s6 = sshll.u32 %s3957_s30, 4  ;;  %s4048_s6 = int_to_ptr.vmem [resolvable:$true] %s191_s6 }
  0x11   : > { %p3799_p11 = scmp.ne.s32.totalorder %s5149_s1, %s3798_s9  ;;  %p3805_p3 = scmp.lt.u32.totalorder %s3798_s9, %s5149_s1 }
  0x12   : > { %p4044_p10 = pnand %p3240_p9, %p5154_p1 }
  0x14   : > { %p3800_p12 = pneg %p4044_p10 }
  0x16   : > { %p3801_p13 = pnand %p3800_p12, %p3799_p11 }
  0x18   : > { %p3802_p0 = pneg %p3801_p13 }
  0x1a   : > { %p3807_p5 = pnand %p3805_p3, %p3802_p0 }
  0x1c   : > { %3810 = shalt.err (!%p3807_p5)
}
  0x1d   : > { %s3811_s14 = scalar_lea.vmem %s176_s28, 8192  ;;  %p3819_p2 = scmp.lt.s32.totalorder %s176_s28, %s176_s28 }
  0x1e   : > { %p3812_p7 = scmp.ne.s32.totalorder %s176_s28, %s3811_s14  ;;  %p3820_p6 = scmp.lt.s32.totalorder %s3811_s14, %s3811_s14 }
  0x20   : > { %p3814_p9 = pnand %p3812_p7, %p3800_p12  ;;  %p3821_p4 = por %p3820_p6, %p3819_p2 }
  0x22   : > { %p3815_p1 = pneg %p3814_p9 }
  0x24   : > { %p3822_p8 = pnand %p3821_p4, %p3815_p1 }
  0x26   : > { %3825 = shalt.err (!%p3822_p8)
}
  0x27   : > { %s3958_s15 = smov 256   ;;  %s3959_s16 = smov 16  }
  0x28   : > { %3243 = dma.hbm_to_vmem [thread:$0]  (!%p4044_p10), %s5149_s1, 8192, %s176_s28, [#allocation6], %s3958_s15, %s3958_s15, %s3959_s16  }
  0x29   : > { %s3826_s7 = scalar_lea.hbm %s5151_s3, 8192 }
  0x2a   : > { %p3827_p11 = scmp.ne.s32.totalorder %s5151_s3, %s3826_s7  ;;  %p3833_p4 = scmp.lt.u32.totalorder %s3826_s7, %s5151_s3 }
  0x2c   : > { %p3829_p1 = pnand %p3827_p11, %p3800_p12 }
  0x2e   : > { %p3830_p2 = pneg %p3829_p1 }
  0x30   : > { %p3835_p6 = pnand %p3833_p4, %p3830_p2 }
  0x32   : > { %3838 = shalt.err (!%p3835_p6)
}
  0x33   : > { %s3839_s28 = scalar_lea.vmem %s4048_s6, 8192  ;;  %p3847_p3 = scmp.lt.s32.totalorder %s4048_s6, %s4048_s6 }
  0x34   : > { %p3840_p8 = scmp.ne.s32.totalorder %s4048_s6, %s3839_s28  ;;  %p3848_p5 = scmp.lt.s32.totalorder %s3839_s28, %s3839_s28 }
  0x36   : > { %p3842_p13 = pnand %p3840_p8, %p3800_p12  ;;  %p3849_p7 = por %p3848_p5, %p3847_p3 }
  0x38   : > { %p3843_p0 = pneg %p3842_p13 }
  0x3a   : > { %p3850_p9 = pnand %p3849_p7, %p3843_p0 }
  0x3c   : > { %3853 = shalt.err (!%p3850_p9)
}
  0x3d   : > { %s3960_s12 = smov 128   ;;  %s3961_s13 = smov 8  }
  0x3e   : > { %3246 = dma.hbm_to_vmem [thread:$0]  (!%p4044_p10), %s5151_s3, 8192, %s4048_s6, [#allocation6], %s3960_s12, %s3960_s12, %s3961_s13  }
  0x3f   : > { %s4101_s16 = sadd.s32 1, %s3954_s21   ;;  %s29_s23 = sadd.s32 1, %s3950_s20 }
  0x40   : > { %s26_s17 = ssub.s32 %s3954_s21, %s4101_s16  ;;  %p36_p11 = scmp.ne.s32.totalorder %s3950_s20, %s3946_s19 }
  0x41   : > { %p27_p12 = scmp.eq.s32.totalorder %s26_s17, 0  ;;  %p37_p1 = scmp.eq.s32.totalorder %s3954_s21, 0 }
  0x42   : > { %p5161_p4 = scmp.eq.s32.totalorder %s4017_s22, 3  ;;  %p3257_p8 = scmp.lt.s32.totalorder %s3954_s21, 4 }
  0x43   : > { %s4110_s27 = scalar_select %p27_p12, %s3950_s20, %s29_s23  }
  0x44   : > { %p38_p2 = por %p37_p1, %p36_p11  ;;  %p4114_p6 = por %p5161_p4, %p36_p11 }
  0x45   : > { %s208_s30 = sand.u32 1, %s3950_s20   ;;  %s3097_s6 = sshll.u32 %s3954_s21, 12 }
  0x46   : > { %s2921_s7 = sshll.u32 %s208_s30, 8  ;;  %s4124_s10 = scalar_lea.hbm %s5148_s0, %s3097_s6 }
  0x47   : > { %s212_s11 = scalar_lea.vmem [#allocation2], %s2921_s7  ;;  %p4128_p10 = pnand %p3257_p8, %p38_p2 }
  0x48   : > { %s220_s28 = sshll.u32 %s212_s11, 4  ;;  %s4132_s15 = scalar_lea.sflag [#allocation3], %s208_s30  ;;  %s4126_s28 = int_to_ptr.vmem [resolvable:$true] %s220_s28 }
  0x49   : > { %s3854_s17 = scalar_lea.hbm %s4124_s10, 4096  ;;  %p3856_p0 = pneg %p4128_p10 }
  0x4a   : > { %p3855_p13 = scmp.ne.s32.totalorder %s4124_s10, %s3854_s17  ;;  %s3859_s6 = scalar_lea.hbm %s5148_s0, 16384 }
  0x4b   : > { %p3860_p7 = scmp.lt.u32.totalorder %s4124_s10, %s5148_s0  ;;  %p3861_p9 = scmp.lt.u32.totalorder %s3859_s6, %s3854_s17 }
  0x4c   : > { %p3857_p3 = pnand %p3856_p0, %p3855_p13  ;;  %p3863_p11 = scmp.lt.u32.totalorder %s3854_s17, %s4124_s10 }
  0x4d   : > { %p3862_p12 = por %p3861_p9, %p3860_p7 }
  0x4e   : > { %p3858_p5 = pneg %p3857_p3 }
  0x4f   : > { %p3864_p1 = por %p3863_p11, %p3862_p12 }
  0x51   : > { %p3865_p2 = pnand %p3864_p1, %p3858_p5 }
  0x53   : > { %3868 = shalt.err (!%p3865_p2)
}
  0x54   : > { %s3869_s30 = scalar_lea.vmem %s4126_s28, 4096  ;;  %s3962_s11 = smov [#allocation2]  }
  0x55   : > { %p3870_p4 = scmp.ne.s32.totalorder %s4126_s28, %s3869_s30  ;;  %s3874_s23 = sshll.u32 %s3962_s11, 4  ;;  %s3875_s23 = int_to_ptr.vmem [resolvable:$false] %s3874_s23 }
  0x56   : > { %s3876_s7 = scalar_lea.vmem %s3875_s23, 8192  ;;  %p3877_p3 = scmp.lt.s32.totalorder %s4126_s28, %s3875_s23 }
  0x57   : > { %p3872_p8 = pnand %p3870_p4, %p3856_p0  ;;  %p3878_p7 = scmp.lt.s32.totalorder %s3876_s7, %s3869_s30 }
  0x59   : > { %p3873_p13 = pneg %p3872_p8  ;;  %p3879_p9 = por %p3878_p7, %p3877_p3 }
  0x5b   : > { %p3880_p12 = pnand %p3879_p9, %p3873_p13 }
  0x5d   : > { %3883 = shalt.err (!%p3880_p12)
}
  0x5e   : > { %3250 = dma.hbm_to_vmem [thread:$0]  (!%p4128_p10), %s4124_s10, 4096, %s4126_s28, %s4132_s15, %s3960_s12, %s3960_s12, %s3961_s13  }
  0x5f   : > { %p5164_p0 = scmp.ne.s32.totalorder %s5159_s26, 0 }
  0x60   : > { %s4166_s17 = sand.u32 (!%p5164_p0), 1, %s3946_s19   ;;  %p5165_p5 = scmp.ne.s32.totalorder (!%p5164_p0), %s5157_s24, 0 }
  0x61   : > { %232 = sbr.rel (%p5164_p0) target bundleno = 890 (0x37a), region = 40  ;;  %s2926_s6 = sshll.u32 (!%p5164_p0), %s4166_s17, 8 }
  0x62   : > { %s235_s8 = scalar_lea.sflag (!%p5164_p0), [#allocation3], %s4166_s17  ;;  %s4170_s9 = scalar_lea.vmem (!%p5164_p0), [#allocation2], %s2926_s6 }
  0x68   : > { %3929 = dma.done.wait (%p5165_p5), %s235_s8, 4096  }
  0x69   : > { %3931 = vsyncadd (%p5165_p5), %s235_s8, 4294963200  ;;  %p5166_p10 = scmp.eq.s32.totalorder %s4017_s22, 0 }
  0x6b   : > { %3933 = dma.done.wait (%p5166_p10), [#allocation6], 16384   ;;  %p5167_p11 = pmov %p5166_p10 }
  0x6c   : > { %v3301_v0 = vld [vmem:[#allocation5 + $0x4] ss:$16 sps:$4 sm:$0xff]   ;;  %v3303_v1 = vld [vmem:[#allocation5] ss:$16 sps:$4 sm:$0xff]   ;;  %v3354_v33 = vld [vmem:[#allocation5 + $0xc] ss:$16 sps:$4 sm:$0xff]  }
  0x6d   : > { %3935 = vsyncadd (%p5167_p11), [#allocation6], 4294950912  ;;  %873 = vmatprep.subr.bf16.mxu1 %v3301_v0  ;;  %v3304_v2 = vld [vmem:[#allocation5 + $0x24] ss:$16 sps:$4 sm:$0xff]   ;;  %v3306_v3 = vld [vmem:[#allocation5 + $0x20] ss:$16 sps:$4 sm:$0xff]  }
  0x6e   : > { %874 = vmatpush1.bf16.msra.mxu1 %v3303_v1  ;;  %v3307_v4 = vld [vmem:[#allocation5 + $0x44] ss:$16 sps:$4 sm:$0xff]   ;;  %v3309_v5 = vld [vmem:[#allocation5 + $0x40] ss:$16 sps:$4 sm:$0xff]   ;;  %v3352_v35 = vld [vmem:[#allocation5 + $0x8] ss:$16 sps:$4 sm:$0xff]  }
  0x6f   : > { %875 = vmatprep.subr.bf16.mxu1 %v3304_v2  ;;  %v3310_v6 = vld [vmem:[#allocation5 + $0x64] ss:$16 sps:$4 sm:$0xff]   ;;  %v3312_v7 = vld [vmem:[#allocation5 + $0x60] ss:$16 sps:$4 sm:$0xff]   ;;  %v3360_v37 = vld [vmem:[#allocation5 + $0x2c] ss:$16 sps:$4 sm:$0xff]  }
  0x70   : > { %v3313_v8 = vld [vmem:[#allocation5 + $0x84] ss:$16 sps:$4 sm:$0xff]   ;;  %v3315_v9 = vld [vmem:[#allocation5 + $0x80] ss:$16 sps:$4 sm:$0xff]   ;;  %v3358_v38 = vld [vmem:[#allocation5 + $0x28] ss:$16 sps:$4 sm:$0xff]  }
  0x71   : > { %v3316_v10 = vld [vmem:[#allocation5 + $0xa4] ss:$16 sps:$4 sm:$0xff]   ;;  %v3318_v11 = vld [vmem:[#allocation5 + $0xa0] ss:$16 sps:$4 sm:$0xff]   ;;  %v3366_v39 = vld [vmem:[#allocation5 + $0x4c] ss:$16 sps:$4 sm:$0xff]  }
  0x72   : > { %876 = vmatpush1.bf16.msra.mxu1 %v3306_v3  ;;  %v3319_v12 = vld [vmem:[#allocation5 + $0xc4] ss:$16 sps:$4 sm:$0xff]   ;;  %v3321_v14 = vld [vmem:[#allocation5 + $0xc0] ss:$16 sps:$4 sm:$0xff]   ;;  %v3364_v42 = vld [vmem:[#allocation5 + $0x48] ss:$16 sps:$4 sm:$0xff]  }
  0x73   : > { %877 = vmatprep.subr.bf16.mxu1 %v3307_v4  ;;  %v4181_v13 = vld [vmem:[%s4170_s9 + $0x4] ss:$8 sps:$4 sm:$0xff]   ;;  %v3324_v16 = vld [vmem:[#allocation5 + $0xe0] ss:$16 sps:$4 sm:$0xff]   ;;  %v4188_v36 = vld [vmem:[%s4170_s9 + $0x14] ss:$8 sps:$4 sm:$0xff]  }
  0x74   : > { %v3322_v15 = vld [vmem:[#allocation5 + $0xe4] ss:$16 sps:$4 sm:$0xff]   ;;  %905 = vmatprep.mubr.bf16.mxu1 %v4181_v13  ;;  %v3327_v18 = vld [vmem:[#allocation5 + $0x100] ss:$16 sps:$4 sm:$0xff]   ;;  %v3372_v43 = vld [vmem:[#allocation5 + $0x6c] ss:$16 sps:$4 sm:$0xff]  }
  0x75   : > { %v3325_v17 = vld [vmem:[#allocation5 + $0x104] ss:$16 sps:$4 sm:$0xff]   ;;  %v3330_v20 = vld [vmem:[#allocation5 + $0x120] ss:$16 sps:$4 sm:$0xff]   ;;  %v3370_v44 = vld [vmem:[#allocation5 + $0x68] ss:$16 sps:$4 sm:$0xff]  }
  0x76   : > { %878 = vmatpush1.bf16.msra.mxu1 %v3309_v5  ;;  %v3328_v19 = vld [vmem:[#allocation5 + $0x124] ss:$16 sps:$4 sm:$0xff]   ;;  %v3333_v22 = vld [vmem:[#allocation5 + $0x140] ss:$16 sps:$4 sm:$0xff]   ;;  %v3378_v45 = vld [vmem:[#allocation5 + $0x8c] ss:$16 sps:$4 sm:$0xff]  }
  0x77   : > { %879 = vmatprep.subr.bf16.mxu1 %v3310_v6  ;;  %v3331_v21 = vld [vmem:[#allocation5 + $0x144] ss:$16 sps:$4 sm:$0xff]   ;;  %v3336_v24 = vld [vmem:[#allocation5 + $0x160] ss:$16 sps:$4 sm:$0xff]   ;;  %v3376_v48 = vld [vmem:[#allocation5 + $0x88] ss:$16 sps:$4 sm:$0xff]  }
  0x78   : > { %v3334_v23 = vld [vmem:[#allocation5 + $0x164] ss:$16 sps:$4 sm:$0xff]   ;;  %v3339_v26 = vld [vmem:[#allocation5 + $0x180] ss:$16 sps:$4 sm:$0xff]   ;;  %v3384_v49 = vld [vmem:[#allocation5 + $0xac] ss:$16 sps:$4 sm:$0xff]  }
  0x79   : > { %v3337_v25 = vld [vmem:[#allocation5 + $0x184] ss:$16 sps:$4 sm:$0xff]   ;;  %v3342_v28 = vld [vmem:[#allocation5 + $0x1a0] ss:$16 sps:$4 sm:$0xff]   ;;  %v3382_v50 = vld [vmem:[#allocation5 + $0xa8] ss:$16 sps:$4 sm:$0xff]  }
  0x7a   : > { %880 = vmatpush1.bf16.msra.mxu1 %v3312_v7  ;;  %v3340_v27 = vld [vmem:[#allocation5 + $0x1a4] ss:$16 sps:$4 sm:$0xff]   ;;  %v3345_v30 = vld [vmem:[#allocation5 + $0x1c0] ss:$16 sps:$4 sm:$0xff]   ;;  %v3390_v51 = vld [vmem:[#allocation5 + $0xcc] ss:$16 sps:$4 sm:$0xff]  }
  0x7b   : > { %881 = vmatprep.subr.bf16.mxu1 %v3313_v8  ;;  %v3343_v29 = vld [vmem:[#allocation5 + $0x1c4] ss:$16 sps:$4 sm:$0xff]   ;;  %v3348_v32 = vld [vmem:[#allocation5 + $0x1e0] ss:$16 sps:$4 sm:$0xff]   ;;  %v3388_v54 = vld [vmem:[#allocation5 + $0xc8] ss:$16 sps:$4 sm:$0xff]  }
  0x7c   : > { %v3346_v31 = vld [vmem:[#allocation5 + $0x1e4] ss:$16 sps:$4 sm:$0xff]   ;;  %v4185_v34 = vld [vmem:[%s4170_s9] ss:$8 sps:$4 sm:$0xff]   ;;  %v4193_v40 = vld [vmem:[%s4170_s9 + $0x10] ss:$8 sps:$4 sm:$0xff]  }
  0x7d   : > { %v4196_v41 = vld [vmem:[%s4170_s9 + $0x24] ss:$8 sps:$4 sm:$0xff]   ;;  %v4201_v46 = vld [vmem:[%s4170_s9 + $0x20] ss:$8 sps:$4 sm:$0xff]   ;;  %v4204_v47 = vld [vmem:[%s4170_s9 + $0x34] ss:$8 sps:$4 sm:$0xff]  }
  0x7e   : > { %882 = vmatpush1.bf16.msra.mxu1 %v3315_v9  ;;  %v4209_v52 = vld [vmem:[%s4170_s9 + $0x30] ss:$8 sps:$4 sm:$0xff]   ;;  %v4212_v53 = vld [vmem:[%s4170_s9 + $0x44] ss:$8 sps:$4 sm:$0xff]   ;;  %v4217_v58 = vld [vmem:[%s4170_s9 + $0x40] ss:$8 sps:$4 sm:$0xff]  }
  0x7f   : > { %883 = vmatprep.subr.bf16.mxu1 %v3316_v10  ;;  %v3396_v55 = vld [vmem:[#allocation5 + $0xec] ss:$16 sps:$4 sm:$0xff]   ;;  %v3394_v56 = vld [vmem:[#allocation5 + $0xe8] ss:$16 sps:$4 sm:$0xff]   ;;  %s2929_s14 = sshll.u32 %s4166_s17, 9  ;;  %s3099_s30 = sshll.u32 %s4017_s22, 13 }
  0x80   : > { %v3402_v57 = vld [vmem:[#allocation5 + $0x10c] ss:$16 sps:$4 sm:$0xff]   ;;  %v3400_v60 = vld [vmem:[#allocation5 + $0x108] ss:$16 sps:$4 sm:$0xff]   ;;  %s4970_s15 = scalar_lea.vmem [#allocation8], %s2929_s14  ;;  %s5099_s6 = scalar_lea.hbm %s5153_s5, %s3099_s30 }
  0x81   : > { %v4220_v59 = vld [vmem:[%s4170_s9 + $0x54] ss:$8 sps:$4 sm:$0xff]   ;;  %v3406_v62 = vld [vmem:[#allocation5 + $0x128] ss:$16 sps:$4 sm:$0xff]   ;;  %v4228_v1 = vld [vmem:[%s4170_s9 + $0x64] ss:$8 sps:$4 sm:$0xff]  }
  0x82   : > { %884 = vmatpush1.bf16.msra.mxu1 %v3318_v11  ;;  %v3408_v61 = vld [vmem:[#allocation5 + $0x12c] ss:$16 sps:$4 sm:$0xff]   ;;  %v4225_v0 = vld [vmem:[%s4170_s9 + $0x50] ss:$8 sps:$4 sm:$0xff]   ;;  %v3447_v5 = vld [vmem:[#allocation7] ss:$8 sps:$4 sm:$0xff]  }
  0x83   : > { %885 = vmatprep.subr.bf16.mxu1 %v3319_v12  ;;  %v3414_v63 = vld [vmem:[#allocation5 + $0x14c] ss:$16 sps:$4 sm:$0xff]   ;;  %v3412_v2 = vld [vmem:[#allocation5 + $0x148] ss:$16 sps:$4 sm:$0xff]   ;;  %s2824_s11 = sshll.u32 %s4970_s15, 4  ;;  %s2810_s22 = scalar_lea.sflag [#allocation4], %s4166_s17  ;;  %s5101_s11 = int_to_ptr.vmem [resolvable:$true] %s2824_s11 }
  0x84   : > { %v3420_v3 = vld [vmem:[#allocation5 + $0x16c] ss:$16 sps:$4 sm:$0xff]   ;;  %v3418_v6 = vld [vmem:[#allocation5 + $0x168] ss:$16 sps:$4 sm:$0xff]   ;;  %s3884_s8 = scalar_lea.vmem %s5101_s11, 8192 }
  0x85   : > { %v3445_v4 = vld [vmem:[#allocation7 + $0x4] ss:$8 sps:$4 sm:$0xff]   ;;  %v4233_v8 = vld [vmem:[%s4170_s9 + $0x60] ss:$8 sps:$4 sm:$0xff]   ;;  %v4236_v9 = vld [vmem:[%s4170_s9 + $0x74] ss:$8 sps:$4 sm:$0xff]   ;;  %p3885_p1 = scmp.ne.s32.totalorder %s5101_s11, %s3884_s8 }
  0x86   : > { %886 = vmatpush1.bf16.msra.mxu1 %v3321_v14  ;;  %v3426_v7 = vld [vmem:[#allocation5 + $0x18c] ss:$16 sps:$4 sm:$0xff]   ;;  %2359 = vmatprep.subr.bf16.mxu0 %v3445_v4  ;;  %v3424_v10 = vld [vmem:[#allocation5 + $0x188] ss:$16 sps:$4 sm:$0xff]  }
  0x87   : > { %887 = vmatprep.subr.bf16.mxu1 %v3322_v15  ;;  %2360 = vmatpush1.bf16.msra.mxu0 %v3447_v5  ;;  %v3432_v11 = vld [vmem:[#allocation5 + $0x1ac] ss:$16 sps:$4 sm:$0xff]   ;;  %v3450_v14 = vld [vmem:[#allocation7 + $0x10] ss:$8 sps:$4 sm:$0xff]   ;;  %p3886_p2 = pnand %p3885_p1, %p4114_p6 }
  0x88   : > { %v3448_v12 = vld [vmem:[#allocation7 + $0x14] ss:$8 sps:$4 sm:$0xff]   ;;  %v3451_v15 = vld [vmem:[#allocation7 + $0x24] ss:$8 sps:$4 sm:$0xff]   ;;  %v4289_v5 = vld [vmem:[%s4170_s9 + $0xd0] ss:$8 sps:$4 sm:$0xff]  }
  0x89   : > { %2361 = vmatprep.subr.bf16.mxu0 %v3448_v12  ;;  %v3487_v4 = vld [vmem:[#allocation7 + $0xe4] ss:$8 sps:$4 sm:$0xff]   ;;  %v4297_v12 = vld [vmem:[%s4170_s9 + $0xe0] ss:$8 sps:$4 sm:$0xff]   ;;  %p3887_p4 = pneg %p3886_p2 }
  0x8a   : > { %888 = vmatpush1.bf16.msra.mxu1 %v3324_v16  ;;  %v3430_v16 = vld [vmem:[#allocation5 + $0x1a8] ss:$16 sps:$4 sm:$0xff]  }
  0x8b   : > { %889 = vmatprep.subr.bf16.mxu1 %v3325_v17  ;;  %v3438_v17 = vld [vmem:[#allocation5 + $0x1cc] ss:$16 sps:$4 sm:$0xff]   ;;  %2362 = vmatpush1.bf16.msra.mxu0 %v3450_v14 }
  0x8c   : > { %2363 = vmatprep.subr.bf16.mxu0 %v3451_v15  ;;  %v4300_v14 = vld [vmem:[%s4170_s9 + $0xf4] ss:$8 sps:$4 sm:$0xff]   ;;  %v4305_v15 = vld [vmem:[%s4170_s9 + $0xf0] ss:$8 sps:$4 sm:$0xff]  }
  0x8e   : > { %890 = vmatpush1.bf16.msra.mxu1 %v3327_v18  ;;  %v3453_v18 = vld [vmem:[#allocation7 + $0x20] ss:$8 sps:$4 sm:$0xff]  }
  0x8f   : > { %891 = vmatprep.subr.bf16.mxu1 %v3328_v19  ;;  %v4241_v19 = vld [vmem:[%s4170_s9 + $0x70] ss:$8 sps:$4 sm:$0xff]   ;;  %2364 = vmatpush1.bf16.msra.mxu0 %v3453_v18 }
  0x92   : > { %892 = vmatpush1.bf16.msra.mxu1 %v3330_v20  ;;  %v4244_v20 = vld [vmem:[%s4170_s9 + $0x84] ss:$8 sps:$4 sm:$0xff]  }
  0x93   : > { %893 = vmatprep.subr.bf16.mxu1 %v3331_v21  ;;  %v3436_v21 = vld [vmem:[#allocation5 + $0x1c8] ss:$16 sps:$4 sm:$0xff]  }
  0x96   : > { %894 = vmatpush1.bf16.msra.mxu1 %v3333_v22  ;;  %v3444_v22 = vld [vmem:[#allocation5 + $0x1ec] ss:$16 sps:$4 sm:$0xff]  }
  0x97   : > { %895 = vmatprep.subr.bf16.mxu1 %v3334_v23  ;;  %v3454_v23 = vld [vmem:[#allocation7 + $0x34] ss:$8 sps:$4 sm:$0xff]  }
  0x98   : > { %2365 = vmatprep.subr.bf16.mxu0 %v3454_v23 }
  0x9a   : > { %896 = vmatpush1.bf16.msra.mxu1 %v3336_v24  ;;  %v3456_v24 = vld [vmem:[#allocation7 + $0x30] ss:$8 sps:$4 sm:$0xff]  }
  0x9b   : > { %897 = vmatprep.subr.bf16.mxu1 %v3337_v25  ;;  %v3457_v25 = vld [vmem:[#allocation7 + $0x44] ss:$8 sps:$4 sm:$0xff]   ;;  %2366 = vmatpush1.bf16.msra.mxu0 %v3456_v24 }
  0x9c   : > { %2367 = vmatprep.subr.bf16.mxu0 %v3457_v25 }
  0x9e   : > { %898 = vmatpush1.bf16.msra.mxu1 %v3339_v26  ;;  %v3442_v26 = vld [vmem:[#allocation5 + $0x1e8] ss:$16 sps:$4 sm:$0xff]  }
  0x9f   : > { %899 = vmatprep.subr.bf16.mxu1 %v3340_v27  ;;  %v3459_v27 = vld [vmem:[#allocation7 + $0x40] ss:$8 sps:$4 sm:$0xff]  }
  0xa0   : > { %2368 = vmatpush1.bf16.msra.mxu0 %v3459_v27 }
  0xa2   : > { %900 = vmatpush1.bf16.msra.mxu1 %v3342_v28  ;;  %v4249_v28 = vld [vmem:[%s4170_s9 + $0x80] ss:$8 sps:$4 sm:$0xff]  }
  0xa3   : > { %901 = vmatprep.subr.bf16.mxu1 %v3343_v29  ;;  %v4252_v29 = vld [vmem:[%s4170_s9 + $0x94] ss:$8 sps:$4 sm:$0xff]  }
  0xa6   : > { %902 = vmatpush1.bf16.msra.mxu1 %v3345_v30  ;;  %v3460_v30 = vld [vmem:[#allocation7 + $0x54] ss:$8 sps:$4 sm:$0xff]  }
  0xa7   : > { %903 = vmatprep.subr.bf16.mxu1 %v3346_v31  ;;  %v3462_v31 = vld [vmem:[#allocation7 + $0x50] ss:$8 sps:$4 sm:$0xff]   ;;  %2369 = vmatprep.subr.bf16.mxu0 %v3460_v30 }
  0xa8   : > { %2370 = vmatpush1.bf16.msra.mxu0 %v3462_v31 }
  0xaa   : > { %904 = vmatpush1.bf16.msra.mxu1 %v3348_v32  ;;  %v3463_v32 = vld [vmem:[#allocation7 + $0x64] ss:$8 sps:$4 sm:$0xff]  }
  0xab   : > { %1066 = vmatprep.subr.bf16.mxu1 %v3354_v33  ;;  %v3465_v33 = vld [vmem:[#allocation7 + $0x60] ss:$8 sps:$4 sm:$0xff]   ;;  %2371 = vmatprep.subr.bf16.mxu0 %v3463_v32 }
  0xac   : > { %2372 = vmatpush1.bf16.msra.mxu0 %v3465_v33 }
  0xad   : > { %906 = vmatmul.mubr.bf16.vlgmr.msra.gmra.mrb[0].mxu1 %v4185_v34 }
  0xae   : > { %1067 = vmatpush1.bf16.msra.mxu1 %v3352_v35  ;;  %915 = vmatprep.mubr.bf16.mxu1 %v4188_v36  ;;  %v4257_v35 = vld [vmem:[%s4170_s9 + $0x90] ss:$8 sps:$4 sm:$0xff]  }
  0xaf   : > { %1068 = vmatprep.subr.bf16.mxu1 %v3360_v37  ;;  %v4260_v37 = vld [vmem:[%s4170_s9 + $0xa4] ss:$8 sps:$4 sm:$0xff]  }
  0xb2   : > { %1069 = vmatpush1.bf16.msra.mxu1 %v3358_v38  ;;  %v3466_v38 = vld [vmem:[#allocation7 + $0x74] ss:$8 sps:$4 sm:$0xff]  }
  0xb3   : > { %1070 = vmatprep.subr.bf16.mxu1 %v3366_v39  ;;  %v3468_v39 = vld [vmem:[#allocation7 + $0x70] ss:$8 sps:$4 sm:$0xff]   ;;  %2373 = vmatprep.subr.bf16.mxu0 %v3466_v38 }
  0xb4   : > { %2374 = vmatpush1.bf16.msra.mxu0 %v3468_v39 }
  0xb5   : > { %916 = vmatmul.mubr.bf16.gmra.mrb[4].mxu1 %v4193_v40 }
  0xb6   : > { %925 = vmatprep.mubr.bf16.mxu1 %v4196_v41  ;;  %1071 = vmatpush1.bf16.msra.mxu1 %v3364_v42  ;;  %v3469_v42 = vld [vmem:[#allocation7 + $0x84] ss:$8 sps:$4 sm:$0xff]  }
  0xb7   : > { %1072 = vmatprep.subr.bf16.mxu1 %v3372_v43  ;;  %v3471_v43 = vld [vmem:[#allocation7 + $0x80] ss:$8 sps:$4 sm:$0xff]   ;;  %2375 = vmatprep.subr.bf16.mxu0 %v3469_v42 }
  0xb8   : > { %2376 = vmatpush1.bf16.msra.mxu0 %v3471_v43 }
  0xba   : > { %1073 = vmatpush1.bf16.msra.mxu1 %v3370_v44  ;;  %v4265_v44 = vld [vmem:[%s4170_s9 + $0xa0] ss:$8 sps:$4 sm:$0xff]  }
  0xbb   : > { %1074 = vmatprep.subr.bf16.mxu1 %v3378_v45  ;;  %v4268_v45 = vld [vmem:[%s4170_s9 + $0xb4] ss:$8 sps:$4 sm:$0xff]  }
  0xbd   : > { %926 = vmatmul.mubr.bf16.gmra.mrb[8].mxu1 %v4201_v46 }
  0xbe   : > { %935 = vmatprep.mubr.bf16.mxu1 %v4204_v47  ;;  %1075 = vmatpush1.bf16.msra.mxu1 %v3376_v48  ;;  %v3472_v48 = vld [vmem:[#allocation7 + $0x94] ss:$8 sps:$4 sm:$0xff]  }
  0xbf   : > { %1076 = vmatprep.subr.bf16.mxu1 %v3384_v49  ;;  %v3474_v49 = vld [vmem:[#allocation7 + $0x90] ss:$8 sps:$4 sm:$0xff]   ;;  %2377 = vmatprep.subr.bf16.mxu0 %v3472_v48 }
  0xc0   : > { %2378 = vmatpush1.bf16.msra.mxu0 %v3474_v49 }
  0xc2   : > { %1077 = vmatpush1.bf16.msra.mxu1 %v3382_v50  ;;  %v3475_v50 = vld [vmem:[#allocation7 + $0xa4] ss:$8 sps:$4 sm:$0xff]  }
  0xc3   : > { %1078 = vmatprep.subr.bf16.mxu1 %v3390_v51  ;;  %v4273_v51 = vld [vmem:[%s4170_s9 + $0xb0] ss:$8 sps:$4 sm:$0xff]   ;;  %2379 = vmatprep.subr.bf16.mxu0 %v3475_v50 }
  0xc5   : > { %936 = vmatmul.mubr.bf16.gmra.mrb[12].mxu1 %v4209_v52 }
  0xc6   : > { %945 = vmatprep.mubr.bf16.mxu1 %v4212_v53  ;;  %1079 = vmatpush1.bf16.msra.mxu1 %v3388_v54  ;;  %v3477_v54 = vld [vmem:[#allocation7 + $0xa0] ss:$8 sps:$4 sm:$0xff]  }
  0xc7   : > { %1080 = vmatprep.subr.bf16.mxu1 %v3396_v55  ;;  %v4276_v55 = vld [vmem:[%s4170_s9 + $0xc4] ss:$8 sps:$4 sm:$0xff]   ;;  %2380 = vmatpush1.bf16.msra.mxu0 %v3477_v54 }
  0xca   : > { %1081 = vmatpush1.bf16.msra.mxu1 %v3394_v56  ;;  %v3478_v56 = vld [vmem:[#allocation7 + $0xb4] ss:$8 sps:$4 sm:$0xff]  }
  0xcb   : > { %1082 = vmatprep.subr.bf16.mxu1 %v3402_v57  ;;  %v3480_v57 = vld [vmem:[#allocation7 + $0xb0] ss:$8 sps:$4 sm:$0xff]   ;;  %2381 = vmatprep.subr.bf16.mxu0 %v3478_v56 }
  0xcc   : > { %2382 = vmatpush1.bf16.msra.mxu0 %v3480_v57 }
  0xcd   : > { %946 = vmatmul.mubr.bf16.gmra.mrb[16].mxu1 %v4217_v58 }
  0xce   : > { %955 = vmatprep.mubr.bf16.mxu1 %v4220_v59  ;;  %1083 = vmatpush1.bf16.msra.mxu1 %v3400_v60  ;;  %v3481_v60 = vld [vmem:[#allocation7 + $0xc4] ss:$8 sps:$4 sm:$0xff]  }
  0xcf   : > { %1084 = vmatprep.subr.bf16.mxu1 %v3408_v61  ;;  %v4281_v61 = vld [vmem:[%s4170_s9 + $0xc0] ss:$8 sps:$4 sm:$0xff]   ;;  %2383 = vmatprep.subr.bf16.mxu0 %v3481_v60 }
  0xd2   : > { %1085 = vmatpush1.bf16.msra.mxu1 %v3406_v62  ;;  %v3483_v62 = vld [vmem:[#allocation7 + $0xc0] ss:$8 sps:$4 sm:$0xff]  }
  0xd3   : > { %1086 = vmatprep.subr.bf16.mxu1 %v3414_v63  ;;  %v4284_v63 = vld [vmem:[%s4170_s9 + $0xd4] ss:$8 sps:$4 sm:$0xff]   ;;  %2384 = vmatpush1.bf16.msra.mxu0 %v3483_v62 }
  0xd5   : > { %956 = vmatmul.mubr.bf16.gmra.mrb[20].mxu1 %v4225_v0 }
  0xd6   : > { %965 = vmatprep.mubr.bf16.mxu1 %v4228_v1  ;;  %1087 = vmatpush1.bf16.msra.mxu1 %v3412_v2  ;;  %v3484_v2 = vld [vmem:[#allocation7 + $0xd4] ss:$8 sps:$4 sm:$0xff]  }
  0xd7   : > { %1088 = vmatprep.subr.bf16.mxu1 %v3420_v3  ;;  %v3486_v3 = vld [vmem:[#allocation7 + $0xd0] ss:$8 sps:$4 sm:$0xff]   ;;  %2385 = vmatprep.subr.bf16.mxu0 %v3484_v2 }
  0xd8   : > { %2386 = vmatpush1.bf16.msra.mxu0 %v3486_v3 }
  0xd9   : > { %2387 = vmatprep.subr.bf16.mxu0 %v3487_v4 }
  0xda   : > { %1089 = vmatpush1.bf16.msra.mxu1 %v3418_v6  ;;  %v3489_v6 = vld [vmem:[#allocation7 + $0xe0] ss:$8 sps:$4 sm:$0xff]  }
  0xdb   : > { %1090 = vmatprep.subr.bf16.mxu1 %v3426_v7  ;;  %v4292_v7 = vld [vmem:[%s4170_s9 + $0xe4] ss:$8 sps:$4 sm:$0xff]   ;;  %s3963_s9 = smov [#allocation8]  }
  0xdc   : > { %2388 = vmatpush1.bf16.msra.mxu0 %v3489_v6  ;;  %s3888_s24 = sshll.u32 %s3963_s9, 4  ;;  %s3889_s24 = int_to_ptr.vmem [resolvable:$false] %s3888_s24 }
  0xdd   : > { %966 = vmatmul.mubr.bf16.gmra.mrb[24].mxu1 %v4233_v8  ;;  %s3890_s26 = scalar_lea.vmem %s3889_s24, 16384  ;;  %p3891_p8 = scmp.lt.s32.totalorder %s5101_s11, %s3889_s24 }
  0xde   : > { %975 = vmatprep.mubr.bf16.mxu1 %v4236_v9  ;;  %1091 = vmatpush1.bf16.msra.mxu1 %v3424_v10  ;;  %v3490_v10 = vld [vmem:[#allocation7 + $0xf4] ss:$8 sps:$4 sm:$0xff]   ;;  %p3892_p13 = scmp.lt.s32.totalorder %s3890_s26, %s3884_s8 }
  0xdf   : > { %1092 = vmatprep.subr.bf16.mxu1 %v3432_v11  ;;  %v3492_v11 = vld [vmem:[#allocation7 + $0xf0] ss:$8 sps:$4 sm:$0xff]   ;;  %2389 = vmatprep.subr.bf16.mxu0 %v3490_v10 }
  0xe0   : > { %2390 = vmatpush1.bf16.msra.mxu0 %v3492_v11  ;;  %p3893_p3 = por %p3892_p13, %p3891_p8 }
  0xe2   : > { %1093 = vmatpush1.bf16.msra.mxu1 %v3430_v16  ;;  %v3495_v16 = vld [vmem:[#allocation7 + $0x104] ss:$8 sps:$4 sm:$0xff]   ;;  %p3894_p7 = pnand %p3893_p3, %p3887_p4 }
  0xe3   : > { %1094 = vmatprep.subr.bf16.mxu1 %v3438_v17  ;;  %2552 = vmatprep.subr.bf16.mxu0 %v3495_v16 }
  0xe5   : > { %976 = vmatmul.mubr.bf16.gmra.mrb[28].mxu1 %v4241_v19 }
  0xe6   : > { %985 = vmatprep.mubr.bf16.mxu1 %v4244_v20  ;;  %1095 = vmatpush1.bf16.msra.mxu1 %v3436_v21 }
  0xe7   : > { %1096 = vmatprep.subr.bf16.mxu1 %v3444_v22 }
  0xea   : > { %1097 = vmatpush1.bf16.msra.mxu1 %v3442_v26 }
  0xed   : > { %986 = vmatmul.mubr.bf16.gmra.mrb[32].mxu1 %v4249_v28 }
  0xee   : > { %995 = vmatprep.mubr.bf16.mxu1 %v4252_v29 }
  0xf5   : > { %996 = vmatmul.mubr.bf16.gmra.mrb[36].mxu1 %v4257_v35 }
  0xf6   : > { %1005 = vmatprep.mubr.bf16.mxu1 %v4260_v37 }
  0xfd   : > { %1006 = vmatmul.mubr.bf16.gmra.mrb[40].mxu1 %v4265_v44 }
  0xfe   : > { %1015 = vmatprep.mubr.bf16.mxu1 %v4268_v45 }
 0x105   : > { %1016 = vmatmul.mubr.bf16.gmra.mrb[44].mxu1 %v4273_v51 }
 0x106   : > { %1025 = vmatprep.mubr.bf16.mxu1 %v4276_v55 }
 0x10d   : > { %1026 = vmatmul.mubr.bf16.gmra.mrb[48].mxu1 %v4281_v61 }
 0x10e   : > { %1035 = vmatprep.mubr.bf16.mxu1 %v4284_v63 }
 0x115   : > { %1036 = vmatmul.mubr.bf16.gmra.mrb[52].mxu1 %v4289_v5 }
 0x116   : > { %1045 = vmatprep.mubr.bf16.mxu1 %v4292_v7 }
 0x11d   : > { %1046 = vmatmul.mubr.bf16.gmra.mrb[56].mxu1 %v4297_v12 }
 0x11e   : > { %1055 = vmatprep.mubr.bf16.mxu1 %v4300_v14 }
 0x125   : > { %1056 = vmatmul.mubr.bf16.gmra.mrb[60].mxu1 %v4305_v15 }
 0x126   : > { %1098 = vmatprep.mubr.bf16.mxu1 %v4181_v13  ;;  %v373_v13 = vlaneseq }
 0x12d   : > { %1099 = vmatmul.mubr.bf16.vlgmr.msra.gmra.mrb[64].mxu1 %v4185_v34  ;;  %v4328_v34 = vshrl.u32 %v373_v13, 7 }
 0x12e   : > { %1108 = vmatprep.mubr.bf16.mxu1 %v4188_v36 }
 0x12f   : > { %v375_v36 = vsub.s32 0, %v4328_v34 }
 0x135   : > { %1109 = vmatmul.mubr.bf16.gmra.mrb[68].mxu1 %v4193_v40  ;;  %v371_v40 = vld [vmem:[%s5150_s2] sm:$0xf] }
 0x136   : > { %1118 = vmatprep.mubr.bf16.mxu1 %v4196_v41  ;;  %v379_v41 = vsub.s32 1, %v4328_v34 }
 0x13d   : > { %1119 = vmatmul.mubr.bf16.gmra.mrb[72].mxu1 %v4201_v46  ;;  %v4339_v46 = vrot.slane %v371_v40, %v375_v36 }
 0x13e   : > { %1128 = vmatprep.mubr.bf16.mxu1 %v4204_v47  ;;  %v4343_v47 = vrot.slane %v371_v40, %v379_v41 }
 0x145   : > { %1129 = vmatmul.mubr.bf16.gmra.mrb[76].mxu1 %v4209_v52 }
 0x146   : > { %1138 = vmatprep.mubr.bf16.mxu1 %v4212_v53 }
 0x14d   : > { %1139 = vmatmul.mubr.bf16.gmra.mrb[80].mxu1 %v4217_v58 }
 0x14e   : > { %1148 = vmatprep.mubr.bf16.mxu1 %v4220_v59 }
 0x155   : > { %1149 = vmatmul.mubr.bf16.gmra.mrb[84].mxu1 %v4225_v0 }
 0x156   : > { %1158 = vmatprep.mubr.bf16.mxu1 %v4228_v1 }
 0x15d   : > { %1159 = vmatmul.mubr.bf16.gmra.mrb[88].mxu1 %v4233_v8 }
 0x15e   : > { %1168 = vmatprep.mubr.bf16.mxu1 %v4236_v9 }
 0x165   : > { %1169 = vmatmul.mubr.bf16.gmra.mrb[92].mxu1 %v4241_v19 }
 0x166   : > { %1178 = vmatprep.mubr.bf16.mxu1 %v4244_v20 }
 0x16d   : > { %1179 = vmatmul.mubr.bf16.gmra.mrb[96].mxu1 %v4249_v28 }
 0x16e   : > { %1188 = vmatprep.mubr.bf16.mxu1 %v4252_v29 }
 0x175   : > { %1189 = vmatmul.mubr.bf16.gmra.mrb[100].mxu1 %v4257_v35 }
 0x176   : > { %1198 = vmatprep.mubr.bf16.mxu1 %v4260_v37 }
 0x17d   : > { %1199 = vmatmul.mubr.bf16.gmra.mrb[104].mxu1 %v4265_v44 }
 0x17e   : > { %1208 = vmatprep.mubr.bf16.mxu1 %v4268_v45 }
 0x180   : > { %v907_v52 = vpop.f32.mrb[0].mxu1 }
 0x181   : > { %v908_v53 = vadd.f32 %v907_v52, %v4339_v46  ;;  %v909_v58 = vpop.f32.mrb[1].mxu1 }
 0x182   : > { %v910_v59 = vadd.f32 %v909_v58, %v4343_v47  ;;  %v911_v0 = vpop.f32.mrb[2].mxu1 }
 0x183   : > { %v1387_v1 = vmul.f32 0.70710677, %v908_v53  ;;  %v912_v8 = vadd.f32 %v911_v0, %v4339_v46  ;;  %v913_v9 = vpop.f32.mrb[3].mxu1  ;;  %v1259_v39 = vmul.f32 0.5, %v908_v53  ;;  %v3493_v0 = vld [vmem:[#allocation7 + $0x100] ss:$8 sps:$4 sm:$0xff]  }
 0x184   : > { %v1388_v17 = vmul.f32 0.70710677, %v910_v59  ;;  %v914_v18 = vadd.f32 %v913_v9, %v4343_v47 }
 0x185   : > { %3541 = verf.f32 %v1387_v1  ;;  %v1391_v19 = vmul.f32 0.70710677, %v912_v8  ;;  %1209 = vmatmul.mubr.bf16.gmra.mrb[108].mxu1 %v4273_v51  ;;  %v1263_v48 = vmul.f32 0.5, %v912_v8 }
 0x186   : > { %3543 = verf.f32 %v1388_v17  ;;  %v1392_v20 = vmul.f32 0.70710677, %v914_v18  ;;  %1218 = vmatprep.mubr.bf16.mxu1 %v4276_v55  ;;  %v1260_v55 = vmul.f32 0.5, %v910_v59  ;;  %v3498_v17 = vld [vmem:[#allocation7 + $0x114] ss:$8 sps:$4 sm:$0xff]  }
 0x187   : > { %3545 = verf.f32 %v1391_v19 }
 0x188   : > { %3547 = verf.f32 %v1392_v20  ;;  %v917_v21 = vpop.f32.mrb[4].mxu1 }
 0x189   : > { %v4353_v22 = vadd.f32 %v917_v21, %v4339_v46  ;;  %v919_v23 = vpop.f32.mrb[5].mxu1 }
 0x18a   : > { %v4356_v24 = vadd.f32 %v919_v23, %v4343_v47  ;;  %v921_v25 = vpop.f32.mrb[6].mxu1 }
 0x18b   : > { %v1395_v26 = vmul.f32 0.70710677, %v4353_v22  ;;  %v922_v27 = vadd.f32 %v921_v25, %v4339_v46  ;;  %v923_v28 = vpop.f32.mrb[7].mxu1  ;;  %v1267_v19 = vmul.f32 0.5, %v4353_v22 }
 0x18c   : > { %v1396_v29 = vmul.f32 0.70710677, %v4356_v24  ;;  %v924_v30 = vadd.f32 %v923_v28, %v4343_v47  ;;  %v1268_v25 = vmul.f32 0.5, %v4356_v24 }
 0x18d   : > { %3549 = verf.f32 %v1395_v26  ;;  %v1399_v31 = vmul.f32 0.70710677, %v922_v27  ;;  %1219 = vmatmul.mubr.bf16.gmra.mrb[112].mxu1 %v4281_v61 }
 0x18e   : > { %3551 = verf.f32 %v1396_v29  ;;  %v1400_v32 = vmul.f32 0.70710677, %v924_v30  ;;  %1228 = vmatprep.mubr.bf16.mxu1 %v4284_v63  ;;  %v1264_v63 = vmul.f32 0.5, %v914_v18  ;;  %v1272_v26 = vmul.f32 0.5, %v924_v30  ;;  %v3501_v30 = vld [vmem:[#allocation7 + $0x124] ss:$8 sps:$4 sm:$0xff]  }
 0x18f   : > { %v3542_v33 = vpop.eup %3541  ;;  %3553 = verf.f32 %v1399_v31 }
 0x190   : > { %v3544_v35 = vpop.eup %3543  ;;  %3555 = verf.f32 %v1400_v32  ;;  %v927_v37 = vpop.f32.mrb[8].mxu1  ;;  %v1643_v42 = vadd.f32 1.0, %v3542_v33 }
 0x191   : > { %v3546_v38 = vpop.eup %3545  ;;  %v4365_v43 = vadd.f32 %v927_v37, %v4339_v46  ;;  %v929_v44 = vpop.f32.mrb[9].mxu1  ;;  %v1644_v54 = vadd.f32 1.0, %v3544_v35 }
 0x192   : > { %v3548_v45 = vpop.eup %3547  ;;  %v1647_v49 = vadd.f32 1.0, %v3546_v38  ;;  %v4368_v50 = vadd.f32 %v929_v44, %v4343_v47  ;;  %v931_v51 = vpop.f32.mrb[10].mxu1  ;;  %v1771_v4 = vmul.f32 %v1643_v42, %v1259_v39 }
 0x193   : > { %v1403_v56 = vmul.f32 0.70710677, %v4365_v43  ;;  %v4372_v57 = vadd.f32 %v931_v51, %v4339_v46  ;;  %v933_v60 = vpop.f32.mrb[11].mxu1  ;;  %v1648_v61 = vadd.f32 1.0, %v3548_v45  ;;  %v1772_v11 = vmul.f32 %v1644_v54, %v1260_v55  ;;  %v3499_v55 = vld [vmem:[#allocation7 + $0x120] ss:$8 sps:$4 sm:$0xff]  }
 0x194   : > { %v1775_v62 = vmul.f32 %v1647_v49, %v1263_v48  ;;  %v1404_v2 = vmul.f32 0.70710677, %v4368_v50  ;;  %v4376_v3 = vadd.f32 %v933_v60, %v4343_v47 }
 0x195   : > { %3557 = verf.f32 %v1403_v56  ;;  %v1407_v6 = vmul.f32 0.70710677, %v4372_v57  ;;  %1229 = vmatmul.mubr.bf16.gmra.mrb[116].mxu1 %v4289_v5  ;;  %v1776_v16 = vmul.f32 %v1648_v61, %v1264_v63  ;;  %v1275_v63 = vmul.f32 0.5, %v4365_v43 }
 0x196   : > { %3559 = verf.f32 %v1404_v2  ;;  %v1408_v10 = vmul.f32 0.70710677, %v4376_v3  ;;  %1238 = vmatprep.mubr.bf16.mxu1 %v4292_v7  ;;  %v1899_v40 = vpack.c.bf16 %v1775_v62, %v1771_v4  ;;  %v1271_v7 = vmul.f32 0.5, %v922_v27  ;;  %v3496_v27 = vld [vmem:[#allocation7 + $0x110] ss:$8 sps:$4 sm:$0xff]  }
 0x197   : > { %v3550_v13 = vpop.eup %3549  ;;  %3561 = verf.f32 %v1407_v6  ;;  %v1900_v59 = vpack.c.bf16 %v1776_v16, %v1772_v11  ;;  %v1279_v2 = vmul.f32 0.5, %v4372_v57  ;;  %v1276_v11 = vmul.f32 0.5, %v4368_v50 }
 0x198   : > { %v3552_v52 = vpop.eup %3551  ;;  %v1651_v53 = vadd.f32 1.0, %v3550_v13  ;;  %3563 = verf.f32 %v1408_v10  ;;  %v937_v58 = vpop.f32.mrb[12].mxu1  ;;  %v1280_v16 = vmul.f32 0.5, %v4376_v3  ;;  %v3507_v3 = vld [vmem:[#allocation7 + $0x144] ss:$8 sps:$4 sm:$0xff]  }
 0x199   : > { %v3554_v1 = vpop.eup %3553  ;;  %v1652_v8 = vadd.f32 1.0, %v3552_v52  ;;  %v4383_v5 = vadd.f32 %v937_v58, %v4339_v46  ;;  %v939_v9 = vpop.f32.mrb[13].mxu1  ;;  %2391 = vmatprep.mubr.bf16.mxu0 %v1900_v59  ;;  %v3502_v59 = vld [vmem:[#allocation7 + $0x130] ss:$8 sps:$4 sm:$0xff]  }
 0x19a   : > { %v3556_v18 = vpop.eup %3555  ;;  %v1655_v20 = vadd.f32 1.0, %v3554_v1  ;;  %v4387_v21 = vadd.f32 %v939_v9, %v4343_v47  ;;  %v941_v23 = vpop.f32.mrb[14].mxu1  ;;  %2392 = vmatmul.mubr.bf16.vlgmr.msra.gmra.mrb[0].mxu0 %v1899_v40  ;;  %v1779_v32 = vmul.f32 %v1651_v53, %v1267_v19 }
 0x19b   : > { %v1656_v28 = vadd.f32 1.0, %v3556_v18  ;;  %v1411_v29 = vmul.f32 0.70710677, %v4383_v5  ;;  %v943_v31 = vpop.f32.mrb[15].mxu1  ;;  %v4393_v22 = vadd.f32 %v941_v23, %v4339_v46  ;;  %2553 = vmatpush1.bf16.msra.mxu0 %v3493_v0  ;;  %v1780_v37 = vmul.f32 %v1652_v8, %v1268_v25  ;;  %v3505_v23 = vld [vmem:[#allocation7 + $0x140] ss:$8 sps:$4 sm:$0xff]  }
 0x19c   : > { %v1783_v33 = vmul.f32 %v1655_v20, %v1271_v7  ;;  %v1412_v35 = vmul.f32 0.70710677, %v4387_v21  ;;  %v4396_v24 = vadd.f32 %v943_v31, %v4343_v47  ;;  %2554 = vmatprep.subr.bf16.mxu0 %v3498_v17  ;;  %v1283_v31 = vmul.f32 0.5, %v4383_v5 }
 0x19d   : > { %v1784_v38 = vmul.f32 %v1656_v28, %v1272_v26  ;;  %3565 = verf.f32 %v1411_v29  ;;  %1239 = vmatmul.mubr.bf16.gmra.mrb[120].mxu1 %v4297_v12  ;;  %v1415_v39 = vmul.f32 0.70710677, %v4393_v22  ;;  %v3510_v28 = vld [vmem:[#allocation7 + $0x154] ss:$8 sps:$4 sm:$0xff]  }
 0x19e   : > { %3567 = verf.f32 %v1412_v35  ;;  %v1903_v42 = vpack.c.bf16 %v1783_v33, %v1779_v32  ;;  %1248 = vmatprep.mubr.bf16.mxu1 %v4300_v14  ;;  %v1416_v45 = vmul.f32 0.70710677, %v4396_v24  ;;  %v3504_v14 = vld [vmem:[#allocation7 + $0x134] ss:$8 sps:$4 sm:$0xff]  }
 0x19f   : > { %v3558_v44 = vpop.eup %3557  ;;  %v1904_v48 = vpack.c.bf16 %v1784_v38, %v1780_v37  ;;  %3569 = verf.f32 %v1415_v39  ;;  %2555 = vmatpush1.bf16.msra.mxu0 %v3496_v27  ;;  %v1284_v37 = vmul.f32 0.5, %v4387_v21  ;;  %v1287_v38 = vmul.f32 0.5, %v4393_v22  ;;  %v3513_v22 = vld [vmem:[#allocation7 + $0x164] ss:$8 sps:$4 sm:$0xff]  }
 0x1a0   : > { %v3560_v49 = vpop.eup %3559  ;;  %v1659_v51 = vadd.f32 1.0, %v3558_v44  ;;  %v947_v54 = vpop.f32.mrb[16].mxu1  ;;  %3571 = verf.f32 %v1416_v45  ;;  %2556 = vmatprep.subr.bf16.mxu0 %v3501_v30  ;;  %v1288_v44 = vmul.f32 0.5, %v4396_v24 }
 0x1a1   : > { %v3562_v56 = vpop.eup %3561  ;;  %v1660_v12 = vadd.f32 1.0, %v3560_v49  ;;  %v4403_v60 = vadd.f32 %v947_v54, %v4339_v46  ;;  %v949_v61 = vpop.f32.mrb[17].mxu1  ;;  %2401 = vmatprep.mubr.bf16.mxu0 %v1904_v48  ;;  %v3508_v49 = vld [vmem:[#allocation7 + $0x150] ss:$8 sps:$4 sm:$0xff]  }
 0x1a2   : > { %v3564_v62 = vpop.eup %3563  ;;  %v1663_v4 = vadd.f32 1.0, %v3562_v56  ;;  %v4408_v6 = vadd.f32 %v949_v61, %v4343_v47  ;;  %v951_v10 = vpop.f32.mrb[18].mxu1  ;;  %2402 = vmatmul.mubr.bf16.gmra.mrb[4].mxu0 %v1903_v42  ;;  %v1787_v53 = vmul.f32 %v1659_v51, %v1275_v63 }
 0x1a3   : > { %v1664_v13 = vadd.f32 1.0, %v3564_v62  ;;  %v1419_v40 = vmul.f32 0.70710677, %v4403_v60  ;;  %v953_v52 = vpop.f32.mrb[19].mxu1  ;;  %v4415_v57 = vadd.f32 %v951_v10, %v4339_v46  ;;  %2557 = vmatpush1.bf16.msra.mxu0 %v3499_v55  ;;  %v1788_v0 = vmul.f32 %v1660_v12, %v1276_v11 }
 0x1a4   : > { %v1791_v58 = vmul.f32 %v1663_v4, %v1279_v2  ;;  %v1420_v43 = vmul.f32 0.70710677, %v4408_v6  ;;  %v4418_v50 = vadd.f32 %v953_v52, %v4343_v47  ;;  %2558 = vmatprep.subr.bf16.mxu0 %v3504_v14  ;;  %v3511_v4 = vld [vmem:[#allocation7 + $0x160] ss:$8 sps:$4 sm:$0xff]   ;;  %v1291_v52 = vmul.f32 0.5, %v4403_v60 }
 0x1a5   : > { %v1792_v1 = vmul.f32 %v1664_v13, %v1280_v16  ;;  %3573 = verf.f32 %v1419_v40  ;;  %1249 = vmatmul.mubr.bf16.gmra.mrb[124].mxu1 %v4305_v15  ;;  %v1423_v8 = vmul.f32 0.70710677, %v4415_v57  ;;  %v3516_v13 = vld [vmem:[#allocation7 + $0x174] ss:$8 sps:$4 sm:$0xff]  }
 0x1a6   : > { %3575 = verf.f32 %v1420_v43  ;;  %v1907_v9 = vpack.c.bf16 %v1791_v58, %v1787_v53  ;;  %v1424_v18 = vmul.f32 0.70710677, %v4418_v50 }
 0x1a7   : > { %v3566_v17 = vpop.eup %3565  ;;  %v1908_v19 = vpack.c.bf16 %v1792_v1, %v1788_v0  ;;  %3577 = verf.f32 %v1423_v8  ;;  %2559 = vmatpush1.bf16.msra.mxu0 %v3502_v59  ;;  %v1292_v0 = vmul.f32 0.5, %v4408_v6  ;;  %v1295_v1 = vmul.f32 0.5, %v4415_v57  ;;  %v3519_v57 = vld [vmem:[#allocation7 + $0x184] ss:$8 sps:$4 sm:$0xff]  }
 0x1a8   : > { %v3568_v7 = vpop.eup %3567  ;;  %v957_v20 = vpop.f32.mrb[20].mxu1  ;;  %v1667_v25 = vadd.f32 1.0, %v3566_v17  ;;  %3579 = verf.f32 %v1424_v18  ;;  %2560 = vmatprep.subr.bf16.mxu0 %v3507_v3  ;;  %v1296_v17 = vmul.f32 0.5, %v4418_v50 }
 0x1a9   : > { %v4424_v26 = vadd.f32 %v957_v20, %v4339_v46  ;;  %v959_v15 = vpop.f32.mrb[21].mxu1  ;;  %2411 = vmatprep.mubr.bf16.mxu0 %v1908_v19  ;;  %v3570_v29 = vpop.eup %3569  ;;  %v1668_v32 = vadd.f32 1.0, %v3568_v7  ;;  %v3514_v7 = vld [vmem:[#allocation7 + $0x170] ss:$8 sps:$4 sm:$0xff]  }
 0x1aa   : > { %v4428_v33 = vadd.f32 %v959_v15, %v4343_v47  ;;  %v961_v35 = vpop.f32.mrb[22].mxu1  ;;  %v3572_v27 = vpop.eup %3571  ;;  %v1671_v30 = vadd.f32 1.0, %v3570_v29  ;;  %2412 = vmatmul.mubr.bf16.gmra.mrb[8].mxu0 %v1907_v9  ;;  %v1795_v51 = vmul.f32 %v1667_v25, %v1283_v31 }
 0x1ab   : > { %v1427_v39 = vmul.f32 0.70710677, %v4424_v26  ;;  %v963_v42 = vpop.f32.mrb[23].mxu1  ;;  %v1672_v45 = vadd.f32 1.0, %v3572_v27  ;;  %v4436_v48 = vadd.f32 %v961_v35, %v4339_v46  ;;  %2561 = vmatpush1.bf16.msra.mxu0 %v3505_v23  ;;  %v1796_v55 = vmul.f32 %v1668_v32, %v1284_v37  ;;  %v3517_v37 = vld [vmem:[#allocation7 + $0x180] ss:$8 sps:$4 sm:$0xff]  }
 0x1ac   : > { %v1428_v5 = vmul.f32 0.70710677, %v4428_v33  ;;  %v1799_v54 = vmul.f32 %v1671_v30, %v1287_v38  ;;  %v4439_v21 = vadd.f32 %v963_v42, %v4343_v47  ;;  %2562 = vmatprep.subr.bf16.mxu0 %v3510_v28  ;;  %v3522_v42 = vld [vmem:[#allocation7 + $0x194] ss:$8 sps:$4 sm:$0xff]  }
 0x1ad   : > { %3581 = verf.f32 %v1427_v39  ;;  %v1800_v56 = vmul.f32 %v1672_v45, %v1288_v44  ;;  %v1431_v24 = vmul.f32 0.70710677, %v4436_v48  ;;  %v1299_v45 = vmul.f32 0.5, %v4424_v26 }
 0x1ae   : > { %3583 = verf.f32 %v1428_v5  ;;  %v1432_v61 = vmul.f32 0.70710677, %v4439_v21  ;;  %v1911_v14 = vpack.c.bf16 %v1799_v54, %v1795_v51 }
 0x1af   : > { %v3574_v12 = vpop.eup %3573  ;;  %3585 = verf.f32 %v1431_v24  ;;  %v1912_v2 = vpack.c.bf16 %v1800_v56, %v1796_v55  ;;  %2563 = vmatpush1.bf16.msra.mxu0 %v3508_v49  ;;  %v1303_v55 = vmul.f32 0.5, %v4436_v48  ;;  %v3525_v48 = vld [vmem:[#allocation7 + $0x1a4] ss:$8 sps:$4 sm:$0xff]  }
 0x1b0   : > { %v3576_v62 = vpop.eup %3575  ;;  %v967_v63 = vpop.f32.mrb[24].mxu1  ;;  %v1675_v10 = vadd.f32 1.0, %v3574_v12  ;;  %3587 = verf.f32 %v1432_v61  ;;  %2564 = vmatprep.subr.bf16.mxu0 %v3513_v22  ;;  %v1300_v22 = vmul.f32 0.5, %v4428_v33  ;;  %v1304_v61 = vmul.f32 0.5, %v4439_v21 }
 0x1b1   : > { %v4444_v11 = vadd.f32 %v967_v63, %v4339_v46  ;;  %v969_v16 = vpop.f32.mrb[25].mxu1  ;;  %v3578_v40 = vpop.eup %3577  ;;  %v1676_v53 = vadd.f32 1.0, %v3576_v62  ;;  %2421 = vmatprep.mubr.bf16.mxu0 %v1912_v2  ;;  %v3520_v63 = vld [vmem:[#allocation7 + $0x190] ss:$8 sps:$4 sm:$0xff]  }
 0x1b2   : > { %v4448_v58 = vadd.f32 %v969_v16, %v4343_v47  ;;  %v971_v43 = vpop.f32.mrb[26].mxu1  ;;  %v3580_v59 = vpop.eup %3579  ;;  %v1679_v3 = vadd.f32 1.0, %v3578_v40  ;;  %2422 = vmatmul.mubr.bf16.gmra.mrb[12].mxu0 %v1911_v14  ;;  %v1803_v20 = vmul.f32 %v1675_v10, %v1291_v52 }
 0x1b3   : > { %v1435_v8 = vmul.f32 0.70710677, %v4444_v11  ;;  %v973_v9 = vpop.f32.mrb[27].mxu1  ;;  %v1680_v18 = vadd.f32 1.0, %v3580_v59  ;;  %v4456_v19 = vadd.f32 %v971_v43, %v4339_v46  ;;  %2565 = vmatpush1.bf16.msra.mxu0 %v3511_v4  ;;  %v1804_v25 = vmul.f32 %v1676_v53, %v1292_v0  ;;  %v3523_v0 = vld [vmem:[#allocation7 + $0x1a0] ss:$8 sps:$4 sm:$0xff]  }
 0x1b4   : > { %v1436_v60 = vmul.f32 0.70710677, %v4448_v58  ;;  %v1807_v23 = vmul.f32 %v1679_v3, %v1295_v1  ;;  %v4459_v6 = vadd.f32 %v973_v9, %v4343_v47  ;;  %2566 = vmatprep.subr.bf16.mxu0 %v3516_v13  ;;  %v3528_v9 = vld [vmem:[#allocation7 + $0x1b4] ss:$8 sps:$4 sm:$0xff]  }
 0x1b5   : > { %3589 = verf.f32 %v1435_v8  ;;  %v1808_v15 = vmul.f32 %v1680_v18, %v1296_v17  ;;  %v1439_v50 = vmul.f32 0.70710677, %v4456_v19  ;;  %v1307_v18 = vmul.f32 0.5, %v4444_v11 }
 0x1b6   : > { %3591 = verf.f32 %v1436_v60  ;;  %v1440_v29 = vmul.f32 0.70710677, %v4459_v6  ;;  %v1915_v31 = vpack.c.bf16 %v1807_v23, %v1803_v20 }
 0x1b7   : > { %v3582_v28 = vpop.eup %3581  ;;  %3593 = verf.f32 %v1439_v50  ;;  %v1916_v27 = vpack.c.bf16 %v1808_v15, %v1804_v25  ;;  %2567 = vmatpush1.bf16.msra.mxu0 %v3514_v7  ;;  %v1311_v25 = vmul.f32 0.5, %v4456_v19  ;;  %v3531_v19 = vld [vmem:[#allocation7 + $0x1c4] ss:$8 sps:$4 sm:$0xff]  }
 0x1b8   : > { %v3584_v32 = vpop.eup %3583  ;;  %v977_v35 = vpop.f32.mrb[28].mxu1  ;;  %v1683_v38 = vadd.f32 1.0, %v3582_v28  ;;  %3595 = verf.f32 %v1440_v29  ;;  %2568 = vmatprep.subr.bf16.mxu0 %v3519_v57  ;;  %v1308_v57 = vmul.f32 0.5, %v4448_v58  ;;  %v1312_v29 = vmul.f32 0.5, %v4459_v6 }
 0x1b9   : > { %v4464_v30 = vadd.f32 %v977_v35, %v4339_v46  ;;  %v979_v39 = vpop.f32.mrb[29].mxu1  ;;  %v3586_v44 = vpop.eup %3585  ;;  %v1684_v5 = vadd.f32 1.0, %v3584_v32  ;;  %2431 = vmatprep.mubr.bf16.mxu0 %v1916_v27  ;;  %v3526_v35 = vld [vmem:[#allocation7 + $0x1b0] ss:$8 sps:$4 sm:$0xff]  }
 0x1ba   : > { %v4468_v49 = vadd.f32 %v979_v39, %v4343_v47  ;;  %v981_v51 = vpop.f32.mrb[30].mxu1  ;;  %v3588_v54 = vpop.eup %3587  ;;  %v1687_v56 = vadd.f32 1.0, %v3586_v44  ;;  %2432 = vmatmul.mubr.bf16.gmra.mrb[16].mxu0 %v1915_v31  ;;  %v1811_v2 = vmul.f32 %v1683_v38, %v1299_v45 }
 0x1bb   : > { %v1443_v24 = vmul.f32 0.70710677, %v4464_v30  ;;  %v983_v12 = vpop.f32.mrb[31].mxu1  ;;  %v1688_v14 = vadd.f32 1.0, %v3588_v54  ;;  %v4476_v62 = vadd.f32 %v981_v51, %v4339_v46  ;;  %2569 = vmatpush1.bf16.msra.mxu0 %v3517_v37  ;;  %v1812_v10 = vmul.f32 %v1684_v5, %v1300_v22  ;;  %v3529_v22 = vld [vmem:[#allocation7 + $0x1c0] ss:$8 sps:$4 sm:$0xff]  }
 0x1bc   : > { %v1444_v26 = vmul.f32 0.70710677, %v4468_v49  ;;  %v1815_v4 = vmul.f32 %v1687_v56, %v1303_v55  ;;  %v4479_v33 = vadd.f32 %v983_v12, %v4343_v47  ;;  %2570 = vmatprep.subr.bf16.mxu0 %v3522_v42  ;;  %v3534_v12 = vld [vmem:[#allocation7 + $0x1d4] ss:$8 sps:$4 sm:$0xff]  }
 0x1bd   : > { %3597 = verf.f32 %v1443_v24  ;;  %v1816_v16 = vmul.f32 %v1688_v14, %v1304_v61  ;;  %v1447_v21 = vmul.f32 0.70710677, %v4476_v62  ;;  %v1315_v14 = vmul.f32 0.5, %v4464_v30 }
 0x1be   : > { %3599 = verf.f32 %v1444_v26  ;;  %v1448_v40 = vmul.f32 0.70710677, %v4479_v33  ;;  %v1919_v52 = vpack.c.bf16 %v1815_v4, %v1811_v2 }
 0x1bf   : > { %v3590_v13 = vpop.eup %3589  ;;  %3601 = verf.f32 %v1447_v21  ;;  %v1920_v59 = vpack.c.bf16 %v1816_v16, %v1812_v10  ;;  %2571 = vmatpush1.bf16.msra.mxu0 %v3520_v63  ;;  %v1319_v10 = vmul.f32 0.5, %v4476_v62  ;;  %v3537_v62 = vld [vmem:[#allocation7 + $0x1e4] ss:$8 sps:$4 sm:$0xff]  }
 0x1c0   : > { %v3592_v53 = vpop.eup %3591  ;;  %v987_v43 = vpop.f32.mrb[32].mxu1  ;;  %v1691_v1 = vadd.f32 1.0, %v3590_v13  ;;  %3603 = verf.f32 %v1448_v40  ;;  %2572 = vmatprep.subr.bf16.mxu0 %v3525_v48  ;;  %v1316_v48 = vmul.f32 0.5, %v4468_v49  ;;  %v1320_v40 = vmul.f32 0.5, %v4479_v33 }
 0x1c1   : > { %v4484_v3 = vadd.f32 %v987_v43, %v4339_v46  ;;  %v989_v8 = vpop.f32.mrb[33].mxu1  ;;  %v3594_v17 = vpop.eup %3593  ;;  %v1692_v60 = vadd.f32 1.0, %v3592_v53  ;;  %2441 = vmatprep.mubr.bf16.mxu0 %v1920_v59  ;;  %v3532_v43 = vld [vmem:[#allocation7 + $0x1d0] ss:$8 sps:$4 sm:$0xff]  }
 0x1c2   : > { %v4488_v7 = vadd.f32 %v989_v8, %v4343_v47  ;;  %v991_v20 = vpop.f32.mrb[34].mxu1  ;;  %v3596_v23 = vpop.eup %3595  ;;  %v1695_v15 = vadd.f32 1.0, %v3594_v17  ;;  %2442 = vmatmul.mubr.bf16.gmra.mrb[20].mxu0 %v1919_v52  ;;  %v1819_v27 = vmul.f32 %v1691_v1, %v1307_v18 }
 0x1c3   : > { %v1451_v50 = vmul.f32 0.70710677, %v4484_v3  ;;  %v993_v28 = vpop.f32.mrb[35].mxu1  ;;  %v1696_v31 = vadd.f32 1.0, %v3596_v23  ;;  %v4496_v32 = vadd.f32 %v991_v20, %v4339_v46  ;;  %2573 = vmatpush1.bf16.msra.mxu0 %v3523_v0  ;;  %v1820_v38 = vmul.f32 %v1692_v60, %v1308_v57  ;;  %v3535_v57 = vld [vmem:[#allocation7 + $0x1e0] ss:$8 sps:$4 sm:$0xff]  }
 0x1c4   : > { %v1452_v11 = vmul.f32 0.70710677, %v4488_v7  ;;  %v1823_v37 = vmul.f32 %v1695_v15, %v1311_v25  ;;  %v4499_v58 = vadd.f32 %v993_v28, %v4343_v47  ;;  %2574 = vmatprep.subr.bf16.mxu0 %v3528_v9  ;;  %v3540_v28 = vld [vmem:[#allocation7 + $0x1f4] ss:$8 sps:$4 sm:$0xff]  }
 0x1c5   : > { %3605 = verf.f32 %v1451_v50  ;;  %v1824_v39 = vmul.f32 %v1696_v31, %v1312_v29  ;;  %v1455_v6 = vmul.f32 0.70710677, %v4496_v32  ;;  %v1323_v31 = vmul.f32 0.5, %v4484_v3 }
 0x1c6   : > { %3607 = verf.f32 %v1452_v11  ;;  %v1456_v44 = vmul.f32 0.70710677, %v4499_v58  ;;  %v1923_v45 = vpack.c.bf16 %v1823_v37, %v1819_v27 }
 0x1c7   : > { %v3598_v42 = vpop.eup %3597  ;;  %3609 = verf.f32 %v1455_v6  ;;  %v1924_v54 = vpack.c.bf16 %v1824_v39, %v1820_v38  ;;  %2575 = vmatpush1.bf16.msra.mxu0 %v3526_v35  ;;  %v1327_v38 = vmul.f32 0.5, %v4496_v32 }
 0x1c8   : > { %v3600_v5 = vpop.eup %3599  ;;  %v997_v51 = vpop.f32.mrb[36].mxu1  ;;  %v1699_v55 = vadd.f32 1.0, %v3598_v42  ;;  %3611 = verf.f32 %v1456_v44  ;;  %2576 = vmatprep.subr.bf16.mxu0 %v3531_v19  ;;  %v1324_v19 = vmul.f32 0.5, %v4488_v7  ;;  %v1328_v44 = vmul.f32 0.5, %v4499_v58 }
 0x1c9   : > { %v4504_v56 = vadd.f32 %v997_v51, %v4339_v46  ;;  %v999_v24 = vpop.f32.mrb[37].mxu1  ;;  %v3602_v61 = vpop.eup %3601  ;;  %v1700_v26 = vadd.f32 1.0, %v3600_v5  ;;  %2451 = vmatprep.mubr.bf16.mxu0 %v1924_v54  ;;  %v3538_v51 = vld [vmem:[#allocation7 + $0x1f0] ss:$8 sps:$4 sm:$0xff]  }
 0x1ca   : > { %v4508_v63 = vadd.f32 %v999_v24, %v4343_v47  ;;  %v1001_v2 = vpop.f32.mrb[38].mxu1  ;;  %v3604_v4 = vpop.eup %3603  ;;  %v1703_v16 = vadd.f32 1.0, %v3602_v61  ;;  %2452 = vmatmul.mubr.bf16.gmra.mrb[24].mxu0 %v1923_v45  ;;  %v1827_v59 = vmul.f32 %v1699_v55, %v1315_v14 }
 0x1cb   : > { %v1459_v21 = vmul.f32 0.70710677, %v4504_v56  ;;  %v1003_v13 = vpop.f32.mrb[39].mxu1  ;;  %v1704_v52 = vadd.f32 1.0, %v3604_v4  ;;  %v4516_v53 = vadd.f32 %v1001_v2, %v4339_v46  ;;  %2577 = vmatpush1.bf16.msra.mxu0 %v3529_v22  ;;  %v1828_v1 = vmul.f32 %v1700_v26, %v1316_v48 }
 0x1cc   : > { %v1460_v30 = vmul.f32 0.70710677, %v4508_v63  ;;  %v1831_v0 = vmul.f32 %v1703_v16, %v1319_v10  ;;  %v4519_v49 = vadd.f32 %v1003_v13, %v4343_v47  ;;  %2578 = vmatprep.subr.bf16.mxu0 %v3534_v12 }
 0x1cd   : > { %3613 = verf.f32 %v1459_v21  ;;  %v1832_v8 = vmul.f32 %v1704_v52, %v1320_v40  ;;  %v1463_v33 = vmul.f32 0.70710677, %v4516_v53  ;;  %v1331_v21 = vmul.f32 0.5, %v4504_v56 }
 0x1ce   : > { %3615 = verf.f32 %v1460_v30  ;;  %v1464_v17 = vmul.f32 0.70710677, %v4519_v49  ;;  %v1927_v18 = vpack.c.bf16 %v1831_v0, %v1827_v59  ;;  %v1335_v59 = vmul.f32 0.5, %v4516_v53 }
 0x1cf   : > { %v3606_v9 = vpop.eup %3605  ;;  %3617 = verf.f32 %v1463_v33  ;;  %v1928_v23 = vpack.c.bf16 %v1832_v8, %v1828_v1  ;;  %2579 = vmatpush1.bf16.msra.mxu0 %v3532_v43  ;;  %v1332_v43 = vmul.f32 0.5, %v4508_v63  ;;  %v1336_v8 = vmul.f32 0.5, %v4519_v49 }
 0x1d0   : > { %v3608_v60 = vpop.eup %3607  ;;  %v1007_v20 = vpop.f32.mrb[40].mxu1  ;;  %v1707_v25 = vadd.f32 1.0, %v3606_v9  ;;  %3619 = verf.f32 %v1464_v17  ;;  %2580 = vmatprep.subr.bf16.mxu0 %v3537_v62 }
 0x1d1   : > { %v4524_v15 = vadd.f32 %v1007_v20, %v4339_v46  ;;  %v1009_v50 = vpop.f32.mrb[41].mxu1  ;;  %v3610_v29 = vpop.eup %3609  ;;  %v1708_v11 = vadd.f32 1.0, %v3608_v60  ;;  %2461 = vmatprep.mubr.bf16.mxu0 %v1928_v23 }
 0x1d2   : > { %v4528_v35 = vadd.f32 %v1009_v50, %v4343_v47  ;;  %v1011_v27 = vpop.f32.mrb[42].mxu1  ;;  %v3612_v37 = vpop.eup %3611  ;;  %v1711_v39 = vadd.f32 1.0, %v3610_v29  ;;  %2462 = vmatmul.mubr.bf16.gmra.mrb[28].mxu0 %v1927_v18  ;;  %v1835_v54 = vmul.f32 %v1707_v25, %v1323_v31 }
 0x1d3   : > { %v1467_v6 = vmul.f32 0.70710677, %v4524_v15  ;;  %v1013_v42 = vpop.f32.mrb[43].mxu1  ;;  %v1712_v45 = vadd.f32 1.0, %v3612_v37  ;;  %v4536_v5 = vadd.f32 %v1011_v27, %v4339_v46  ;;  %2581 = vmatpush1.bf16.msra.mxu0 %v3535_v57  ;;  %v1836_v32 = vmul.f32 %v1708_v11, %v1324_v19 }
 0x1d4   : > { %v1468_v3 = vmul.f32 0.70710677, %v4528_v35  ;;  %v1839_v22 = vmul.f32 %v1711_v39, %v1327_v38  ;;  %v4539_v7 = vadd.f32 %v1013_v42, %v4343_v47  ;;  %2582 = vmatprep.subr.bf16.mxu0 %v3540_v28  ;;  %v1339_v37 = vmul.f32 0.5, %v4524_v15 }
 0x1d5   : > { %3621 = verf.f32 %v1467_v6  ;;  %v1840_v55 = vmul.f32 %v1712_v45, %v1328_v44  ;;  %v1471_v58 = vmul.f32 0.70710677, %v4536_v5  ;;  %v1340_v42 = vmul.f32 0.5, %v4528_v35 }
 0x1d6   : > { %3623 = verf.f32 %v1468_v3  ;;  %v1472_v12 = vmul.f32 0.70710677, %v4539_v7  ;;  %v1931_v61 = vpack.c.bf16 %v1839_v22, %v1835_v54  ;;  %v1343_v44 = vmul.f32 0.5, %v4536_v5 }
 0x1d7   : > { %v3614_v24 = vpop.eup %3613  ;;  %3625 = verf.f32 %v1471_v58  ;;  %v1932_v2 = vpack.c.bf16 %v1840_v55, %v1836_v32  ;;  %2583 = vmatpush1.bf16.msra.mxu0 %v3538_v51  ;;  %v1344_v54 = vmul.f32 0.5, %v4539_v7 }
 0x1d8   : > { %v3616_v14 = vpop.eup %3615  ;;  %v1017_v26 = vpop.f32.mrb[44].mxu1  ;;  %v1715_v4 = vadd.f32 1.0, %v3614_v24  ;;  %3627 = verf.f32 %v1472_v12 }
 0x1d9   : > { %v4544_v48 = vadd.f32 %v1017_v26, %v4339_v46  ;;  %v1019_v10 = vpop.f32.mrb[45].mxu1  ;;  %v3618_v16 = vpop.eup %3617  ;;  %v1716_v13 = vadd.f32 1.0, %v3616_v14  ;;  %2471 = vmatprep.mubr.bf16.mxu0 %v1932_v2 }
 0x1da   : > { %v4548_v40 = vadd.f32 %v1019_v10, %v4343_v47  ;;  %v1021_v52 = vpop.f32.mrb[46].mxu1  ;;  %v3620_v30 = vpop.eup %3619  ;;  %v1719_v0 = vadd.f32 1.0, %v3618_v16  ;;  %2472 = vmatmul.mubr.bf16.gmra.mrb[32].mxu0 %v1931_v61  ;;  %v1843_v17 = vmul.f32 %v1715_v4, %v1331_v21 }
 0x1db   : > { %v1475_v62 = vmul.f32 0.70710677, %v4544_v48  ;;  %v1023_v1 = vpop.f32.mrb[47].mxu1  ;;  %v1720_v33 = vadd.f32 1.0, %v3620_v30  ;;  %v4556_v9 = vadd.f32 %v1021_v52, %v4339_v46  ;;  %v1844_v53 = vmul.f32 %v1716_v13, %v1332_v43 }
 0x1dc   : > { %v1476_v56 = vmul.f32 0.70710677, %v4548_v40  ;;  %v1847_v18 = vmul.f32 %v1719_v0, %v1335_v59  ;;  %v4559_v63 = vadd.f32 %v1023_v1, %v4343_v47  ;;  %v1347_v52 = vmul.f32 0.5, %v4544_v48 }
 0x1dd   : > { %3629 = verf.f32 %v1475_v62  ;;  %v1848_v60 = vmul.f32 %v1720_v33, %v1336_v8  ;;  %v1479_v20 = vmul.f32 0.70710677, %v4556_v9  ;;  %v1348_v62 = vmul.f32 0.5, %v4548_v40 }
 0x1de   : > { %3631 = verf.f32 %v1476_v56  ;;  %v1480_v49 = vmul.f32 0.70710677, %v4559_v63  ;;  %v1935_v57 = vpack.c.bf16 %v1847_v18, %v1843_v17  ;;  %v1351_v1 = vmul.f32 0.5, %v4556_v9 }
 0x1df   : > { %v3622_v23 = vpop.eup %3621  ;;  %3633 = verf.f32 %v1479_v20  ;;  %v1936_v28 = vpack.c.bf16 %v1848_v60, %v1844_v53  ;;  %v1352_v17 = vmul.f32 0.5, %v4559_v63 }
 0x1e0   : > { %v3624_v25 = vpop.eup %3623  ;;  %v1027_v50 = vpop.f32.mrb[48].mxu1  ;;  %v1723_v29 = vadd.f32 1.0, %v3622_v23  ;;  %3635 = verf.f32 %v1480_v49 }
 0x1e1   : > { %v4564_v31 = vadd.f32 %v1027_v50, %v4339_v46  ;;  %v1029_v11 = vpop.f32.mrb[49].mxu1  ;;  %v3626_v27 = vpop.eup %3625  ;;  %v1724_v19 = vadd.f32 1.0, %v3624_v25  ;;  %2481 = vmatprep.mubr.bf16.mxu0 %v1936_v28 }
 0x1e2   : > { %v4568_v38 = vadd.f32 %v1029_v11, %v4343_v47  ;;  %v1031_v39 = vpop.f32.mrb[50].mxu1  ;;  %v3628_v6 = vpop.eup %3627  ;;  %v1727_v45 = vadd.f32 1.0, %v3626_v27  ;;  %2482 = vmatmul.mubr.bf16.gmra.mrb[36].mxu0 %v1935_v57  ;;  %v1851_v55 = vmul.f32 %v1723_v29, %v1339_v37 }
 0x1e3   : > { %v1483_v3 = vmul.f32 0.70710677, %v4564_v31  ;;  %v1033_v51 = vpop.f32.mrb[51].mxu1  ;;  %v1728_v22 = vadd.f32 1.0, %v3628_v6  ;;  %v4576_v32 = vadd.f32 %v1031_v39, %v4339_v46  ;;  %v1852_v5 = vmul.f32 %v1724_v19, %v1340_v42 }
 0x1e4   : > { %v1484_v15 = vmul.f32 0.70710677, %v4568_v38  ;;  %v1855_v58 = vmul.f32 %v1727_v45, %v1343_v44  ;;  %v4579_v35 = vadd.f32 %v1033_v51, %v4343_v47  ;;  %v383_v19 = vsub.s32 2, %v4328_v34 }
 0x1e5   : > { %3637 = verf.f32 %v1483_v3  ;;  %v1856_v24 = vmul.f32 %v1728_v22, %v1344_v54  ;;  %v1487_v12 = vmul.f32 0.70710677, %v4576_v32  ;;  %v1355_v6 = vmul.f32 0.5, %v4564_v31 }
 0x1e6   : > { %3639 = verf.f32 %v1484_v15  ;;  %v1488_v7 = vmul.f32 0.70710677, %v4579_v35  ;;  %v1939_v14 = vpack.c.bf16 %v1855_v58, %v1851_v55  ;;  %v387_v3 = vsub.s32 3, %v4328_v34 }
 0x1e7   : > { %v3630_v61 = vpop.eup %3629  ;;  %3641 = verf.f32 %v1487_v12  ;;  %v1940_v4 = vpack.c.bf16 %v1856_v24, %v1852_v5  ;;  %v1356_v54 = vmul.f32 0.5, %v4568_v38  ;;  %v1359_v22 = vmul.f32 0.5, %v4576_v32 }
 0x1e8   : > { %v3632_v26 = vpop.eup %3631  ;;  %v1037_v2 = vpop.f32.mrb[52].mxu1  ;;  %v1731_v10 = vadd.f32 1.0, %v3630_v61  ;;  %3643 = verf.f32 %v1488_v7  ;;  %v1360_v31 = vmul.f32 0.5, %v4579_v35 }
 0x1e9   : > { %v4584_v16 = vadd.f32 %v1037_v2, %v4339_v46  ;;  %v1039_v21 = vpop.f32.mrb[53].mxu1  ;;  %v3634_v13 = vpop.eup %3633  ;;  %v1732_v30 = vadd.f32 1.0, %v3632_v26  ;;  %2491 = vmatprep.mubr.bf16.mxu0 %v1940_v4 }
 0x1ea   : > { %v4588_v43 = vadd.f32 %v1039_v21, %v4343_v47  ;;  %v1041_v59 = vpop.f32.mrb[54].mxu1  ;;  %v3636_v0 = vpop.eup %3635  ;;  %v1735_v8 = vadd.f32 1.0, %v3634_v13  ;;  %2492 = vmatmul.mubr.bf16.gmra.mrb[40].mxu0 %v1939_v14  ;;  %v1859_v60 = vmul.f32 %v1731_v10, %v1347_v52 }
 0x1eb   : > { %v1491_v33 = vmul.f32 0.70710677, %v4584_v16  ;;  %v1043_v56 = vpop.f32.mrb[55].mxu1  ;;  %v1736_v18 = vadd.f32 1.0, %v3636_v0  ;;  %v4596_v53 = vadd.f32 %v1041_v59, %v4339_v46  ;;  %v1860_v9 = vmul.f32 %v1732_v30, %v1348_v62  ;;  %v3797_v0 = vld [vmem:[%s5150_s2] sm:$0xf] }
 0x1ec   : > { %v1492_v48 = vmul.f32 0.70710677, %v4588_v43  ;;  %v1863_v20 = vmul.f32 %v1735_v8, %v1351_v1  ;;  %v4599_v40 = vadd.f32 %v1043_v56, %v4343_v47  ;;  %v4631_v62 = vrot.slane %v3797_v0, %v383_v19 }
 0x1ed   : > { %3645 = verf.f32 %v1491_v33  ;;  %v1864_v23 = vmul.f32 %v1736_v18, %v1352_v17  ;;  %v1495_v49 = vmul.f32 0.70710677, %v4596_v53  ;;  %v1363_v8 = vmul.f32 0.5, %v4584_v16 }
 0x1ee   : > { %3647 = verf.f32 %v1492_v48  ;;  %v1496_v63 = vmul.f32 0.70710677, %v4599_v40  ;;  %v1943_v25 = vpack.c.bf16 %v1863_v20, %v1859_v60  ;;  %v4637_v18 = vrot.slane %v3797_v0, %v387_v3 }
 0x1ef   : > { %v3638_v57 = vpop.eup %3637  ;;  %3649 = verf.f32 %v1495_v49  ;;  %v1944_v29 = vpack.c.bf16 %v1864_v23, %v1860_v9  ;;  %v1364_v60 = vmul.f32 0.5, %v4588_v43  ;;  %v1367_v20 = vmul.f32 0.5, %v4596_v53 }
 0x1f0   : > { %v3640_v50 = vpop.eup %3639  ;;  %v1047_v28 = vpop.f32.mrb[56].mxu1  ;;  %v1739_v11 = vadd.f32 1.0, %v3638_v57  ;;  %3651 = verf.f32 %v1496_v63  ;;  %v1368_v16 = vmul.f32 0.5, %v4599_v40 }
 0x1f1   : > { %v4604_v27 = vadd.f32 %v1047_v28, %v4339_v46  ;;  %v1049_v37 = vpop.f32.mrb[57].mxu1  ;;  %v3642_v39 = vpop.eup %3641  ;;  %v1740_v42 = vadd.f32 1.0, %v3640_v50  ;;  %2501 = vmatprep.mubr.bf16.mxu0 %v1944_v29 }
 0x1f2   : > { %v4609_v44 = vadd.f32 %v1049_v37, %v4343_v47  ;;  %v1051_v45 = vpop.f32.mrb[58].mxu1  ;;  %v3644_v51 = vpop.eup %3643  ;;  %v1743_v15 = vadd.f32 1.0, %v3642_v39  ;;  %2502 = vmatmul.mubr.bf16.gmra.mrb[44].mxu0 %v1943_v25  ;;  %v1867_v61 = vmul.f32 %v1739_v11, %v1355_v6 }
 0x1f3   : > { %v1499_v55 = vmul.f32 0.70710677, %v4604_v27  ;;  %v1053_v58 = vpop.f32.mrb[59].mxu1  ;;  %v1744_v5 = vadd.f32 1.0, %v3644_v51  ;;  %v4618_v12 = vadd.f32 %v1051_v45, %v4339_v46  ;;  %v1868_v32 = vmul.f32 %v1740_v42, %v1356_v54 }
 0x1f4   : > { %v1500_v24 = vmul.f32 0.70710677, %v4609_v44  ;;  %v1871_v7 = vmul.f32 %v1743_v15, %v1359_v22  ;;  %v4621_v38 = vadd.f32 %v1053_v58, %v4343_v47  ;;  %v1371_v51 = vmul.f32 0.5, %v4604_v27 }
 0x1f5   : > { %3653 = verf.f32 %v1499_v55  ;;  %v1872_v14 = vmul.f32 %v1744_v5, %v1360_v31  ;;  %v1503_v26 = vmul.f32 0.70710677, %v4618_v12  ;;  %v1372_v58 = vmul.f32 0.5, %v4609_v44 }
 0x1f6   : > { %3655 = verf.f32 %v1500_v24  ;;  %v1504_v35 = vmul.f32 0.70710677, %v4621_v38  ;;  %v1947_v4 = vpack.c.bf16 %v1871_v7, %v1867_v61  ;;  %v1375_v31 = vmul.f32 0.5, %v4618_v12 }
 0x1f7   : > { %v3646_v2 = vpop.eup %3645  ;;  %3657 = verf.f32 %v1503_v26  ;;  %v1948_v13 = vpack.c.bf16 %v1872_v14, %v1868_v32  ;;  %v1376_v7 = vmul.f32 0.5, %v4621_v38 }
 0x1f8   : > { %v3648_v10 = vpop.eup %3647  ;;  %v1057_v21 = vpop.f32.mrb[60].mxu1  ;;  %v1747_v52 = vadd.f32 1.0, %v3646_v2  ;;  %3659 = verf.f32 %v1504_v35 }
 0x1f9   : > { %v4626_v30 = vadd.f32 %v1057_v21, %v4339_v46  ;;  %v1059_v59 = vpop.f32.mrb[61].mxu1  ;;  %v3650_v1 = vpop.eup %3649  ;;  %v1748_v33 = vadd.f32 1.0, %v3648_v10  ;;  %2511 = vmatprep.mubr.bf16.mxu0 %v1948_v13 }
 0x1fa   : > { %v4635_v56 = vadd.f32 %v1059_v59, %v4343_v47  ;;  %v1061_v17 = vpop.f32.mrb[62].mxu1  ;;  %v3652_v48 = vpop.eup %3651  ;;  %v1751_v9 = vadd.f32 1.0, %v3650_v1  ;;  %2512 = vmatmul.mubr.bf16.gmra.mrb[48].mxu0 %v1947_v4  ;;  %v1875_v50 = vmul.f32 %v1747_v52, %v1363_v8 }
 0x1fb   : > { %v1507_v23 = vmul.f32 0.70710677, %v4626_v30  ;;  %v1063_v49 = vpop.f32.mrb[63].mxu1  ;;  %v1752_v57 = vadd.f32 1.0, %v3652_v48  ;;  %v4645_v25 = vadd.f32 %v1061_v17, %v4339_v46  ;;  %v1876_v53 = vmul.f32 %v1748_v33, %v1364_v60 }
 0x1fc   : > { %v1508_v63 = vmul.f32 0.70710677, %v4635_v56  ;;  %v1879_v28 = vmul.f32 %v1751_v9, %v1367_v20  ;;  %v4648_v43 = vadd.f32 %v1063_v49, %v4343_v47  ;;  %v1379_v17 = vmul.f32 0.5, %v4626_v30 }
 0x1fd   : > { %3661 = verf.f32 %v1507_v23  ;;  %v1880_v29 = vmul.f32 %v1752_v57, %v1368_v16  ;;  %v1511_v11 = vmul.f32 0.70710677, %v4645_v25  ;;  %v1380_v23 = vmul.f32 0.5, %v4635_v56 }
 0x1fe   : > { %3663 = verf.f32 %v1508_v63  ;;  %v1512_v40 = vmul.f32 0.70710677, %v4648_v43  ;;  %v1951_v19 = vpack.c.bf16 %v1879_v28, %v1875_v50  ;;  %v1383_v49 = vmul.f32 0.5, %v4645_v25 }
 0x1ff   : > { %v3654_v37 = vpop.eup %3653  ;;  %3665 = verf.f32 %v1511_v11  ;;  %v1952_v46 = vpack.c.bf16 %v1880_v29, %v1876_v53  ;;  %v1384_v50 = vmul.f32 0.5, %v4648_v43 }
 0x200   : > { %v3656_v39 = vpop.eup %3655  ;;  %v1100_v6 = vpop.f32.mrb[64].mxu1  ;;  %v1755_v42 = vadd.f32 1.0, %v3654_v37  ;;  %3667 = verf.f32 %v1512_v40 }
 0x201   : > { %v4653_v45 = vadd.f32 %v1100_v6, %v4631_v62  ;;  %v1102_v47 = vpop.f32.mrb[65].mxu1  ;;  %v3658_v3 = vpop.eup %3657  ;;  %v1756_v54 = vadd.f32 1.0, %v3656_v39  ;;  %2521 = vmatprep.mubr.bf16.mxu0 %v1952_v46 }
 0x202   : > { %v4657_v22 = vadd.f32 %v1102_v47, %v4637_v18  ;;  %v1104_v15 = vpop.f32.mrb[66].mxu1  ;;  %v3660_v55 = vpop.eup %3659  ;;  %v1759_v5 = vadd.f32 1.0, %v3658_v3  ;;  %2522 = vmatmul.mubr.bf16.gmra.mrb[52].mxu0 %v1951_v19  ;;  %v1883_v26 = vmul.f32 %v1755_v42, %v1371_v51 }
 0x203   : > { %v1389_v24 = vmul.f32 0.70710677, %v4653_v45  ;;  %v1106_v61 = vpop.f32.mrb[67].mxu1  ;;  %v1760_v32 = vadd.f32 1.0, %v3660_v55  ;;  %v4665_v14 = vadd.f32 %v1104_v15, %v4631_v62  ;;  %v1884_v12 = vmul.f32 %v1756_v54, %v1372_v58 }
 0x204   : > { %v1390_v27 = vmul.f32 0.70710677, %v4657_v22  ;;  %v1887_v2 = vmul.f32 %v1759_v5, %v1375_v31  ;;  %v4668_v44 = vadd.f32 %v1106_v61, %v4637_v18  ;;  %v1261_v15 = vmul.f32 0.5, %v4653_v45 }
 0x205   : > { %3669 = verf.f32 %v1389_v24  ;;  %v1888_v35 = vmul.f32 %v1760_v32, %v1376_v7  ;;  %v1393_v4 = vmul.f32 0.70710677, %v4665_v14  ;;  %v1262_v24 = vmul.f32 0.5, %v4657_v22 }
 0x206   : > { %3671 = verf.f32 %v1390_v27  ;;  %v1394_v38 = vmul.f32 0.70710677, %v4668_v44  ;;  %v1955_v21 = vpack.c.bf16 %v1887_v2, %v1883_v26  ;;  %v1265_v61 = vmul.f32 0.5, %v4665_v14 }
 0x207   : > { %v3662_v10 = vpop.eup %3661  ;;  %3673 = verf.f32 %v1393_v4  ;;  %v1956_v59 = vpack.c.bf16 %v1888_v35, %v1884_v12  ;;  %v1266_v26 = vmul.f32 0.5, %v4668_v44 }
 0x208   : > { %v3664_v13 = vpop.eup %3663  ;;  %v1110_v52 = vpop.f32.mrb[68].mxu1  ;;  %v1763_v0 = vadd.f32 1.0, %v3662_v10  ;;  %3675 = verf.f32 %v1394_v38 }
 0x209   : > { %v4673_v1 = vadd.f32 %v1110_v52, %v4631_v62  ;;  %v1112_v8 = vpop.f32.mrb[69].mxu1  ;;  %v3666_v33 = vpop.eup %3665  ;;  %v1764_v48 = vadd.f32 1.0, %v3664_v13  ;;  %2531 = vmatprep.mubr.bf16.mxu0 %v1956_v59 }
 0x20a   : > { %v4677_v60 = vadd.f32 %v1112_v8, %v4637_v18  ;;  %v1114_v20 = vpop.f32.mrb[70].mxu1  ;;  %v3668_v9 = vpop.eup %3667  ;;  %v1767_v16 = vadd.f32 1.0, %v3666_v33  ;;  %2532 = vmatmul.mubr.bf16.gmra.mrb[56].mxu0 %v1955_v21  ;;  %v1891_v29 = vmul.f32 %v1763_v0, %v1379_v17 }
 0x20b   : > { %v1397_v57 = vmul.f32 0.70710677, %v4673_v1  ;;  %v1116_v63 = vpop.f32.mrb[71].mxu1  ;;  %v1768_v28 = vadd.f32 1.0, %v3668_v9  ;;  %v4685_v53 = vadd.f32 %v1114_v20, %v4631_v62  ;;  %v1892_v25 = vmul.f32 %v1764_v48, %v1380_v23 }
 0x20c   : > { %v1398_v30 = vmul.f32 0.70710677, %v4677_v60  ;;  %v1895_v11 = vmul.f32 %v1767_v16, %v1383_v49  ;;  %v4688_v56 = vadd.f32 %v1116_v63, %v4637_v18  ;;  %v1269_v20 = vmul.f32 0.5, %v4673_v1 }
 0x20d   : > { %3677 = verf.f32 %v1397_v57  ;;  %v1896_v37 = vmul.f32 %v1768_v28, %v1384_v50  ;;  %v1401_v40 = vmul.f32 0.70710677, %v4685_v53  ;;  %v1270_v57 = vmul.f32 0.5, %v4677_v60 }
 0x20e   : > { %3679 = verf.f32 %v1398_v30  ;;  %v1402_v43 = vmul.f32 0.70710677, %v4688_v56  ;;  %v1959_v39 = vpack.c.bf16 %v1895_v11, %v1891_v29  ;;  %v1273_v63 = vmul.f32 0.5, %v4685_v53 }
 0x20f   : > { %v3670_v19 = vpop.eup %3669  ;;  %3681 = verf.f32 %v1401_v40  ;;  %v1960_v42 = vpack.c.bf16 %v1896_v37, %v1892_v25  ;;  %v1274_v29 = vmul.f32 0.5, %v4688_v56 }
 0x210   : > { %v3672_v6 = vpop.eup %3671  ;;  %v1120_v46 = vpop.f32.mrb[72].mxu1  ;;  %v1645_v47 = vadd.f32 1.0, %v3670_v19  ;;  %3683 = verf.f32 %v1402_v43 }
 0x211   : > { %v4693_v3 = vadd.f32 %v1120_v46, %v4631_v62  ;;  %v1122_v51 = vpop.f32.mrb[73].mxu1  ;;  %v3674_v54 = vpop.eup %3673  ;;  %v1646_v55 = vadd.f32 1.0, %v3672_v6  ;;  %2541 = vmatprep.mubr.bf16.mxu0 %v1960_v42 }
 0x212   : > { %v4697_v58 = vadd.f32 %v1122_v51, %v4637_v18  ;;  %v1124_v31 = vpop.f32.mrb[74].mxu1  ;;  %v3676_v5 = vpop.eup %3675  ;;  %v1649_v7 = vadd.f32 1.0, %v3674_v54  ;;  %2542 = vmatmul.mubr.bf16.gmra.mrb[60].mxu0 %v1959_v39  ;;  %v1773_v35 = vmul.f32 %v1645_v47, %v1261_v15 }
 0x213   : > { %v1405_v32 = vmul.f32 0.70710677, %v4693_v3  ;;  %v1126_v27 = vpop.f32.mrb[75].mxu1  ;;  %v1650_v2 = vadd.f32 1.0, %v3676_v5  ;;  %v4705_v12 = vadd.f32 %v1124_v31, %v4631_v62  ;;  %v1774_v14 = vmul.f32 %v1646_v55, %v1262_v24 }
 0x214   : > { %v1406_v45 = vmul.f32 0.70710677, %v4697_v58  ;;  %v1777_v4 = vmul.f32 %v1649_v7, %v1265_v61  ;;  %v4708_v22 = vadd.f32 %v1126_v27, %v4637_v18  ;;  %v1277_v31 = vmul.f32 0.5, %v4693_v3 }
 0x215   : > { %3685 = verf.f32 %v1405_v32  ;;  %v1778_v10 = vmul.f32 %v1650_v2, %v1266_v26  ;;  %v1409_v38 = vmul.f32 0.70710677, %v4705_v12  ;;  %v1278_v32 = vmul.f32 0.5, %v4697_v58 }
 0x216   : > { %3687 = verf.f32 %v1406_v45  ;;  %v1901_v13 = vpack.c.bf16 %v1777_v4, %v1773_v35  ;;  %v1410_v44 = vmul.f32 0.70710677, %v4708_v22  ;;  %v1281_v27 = vmul.f32 0.5, %v4705_v12 }
 0x217   : > { %v3678_v21 = vpop.eup %3677  ;;  %3689 = verf.f32 %v1409_v38  ;;  %v1902_v0 = vpack.c.bf16 %v1778_v10, %v1774_v14  ;;  %v1282_v35 = vmul.f32 0.5, %v4708_v22 }
 0x218   : > { %v3680_v52 = vpop.eup %3679  ;;  %v1130_v59 = vpop.f32.mrb[76].mxu1  ;;  %v1653_v8 = vadd.f32 1.0, %v3678_v21  ;;  %3691 = verf.f32 %v1410_v44 }
 0x219   : > { %v4713_v33 = vadd.f32 %v1130_v59, %v4631_v62  ;;  %v1132_v17 = vpop.f32.mrb[77].mxu1  ;;  %v3682_v48 = vpop.eup %3681  ;;  %v1654_v9 = vadd.f32 1.0, %v3680_v52  ;;  %2584 = vmatprep.mubr.bf16.mxu0 %v1902_v0 }
 0x21a   : > { %v4717_v23 = vadd.f32 %v1132_v17, %v4637_v18  ;;  %v1134_v49 = vpop.f32.mrb[78].mxu1  ;;  %v3684_v16 = vpop.eup %3683  ;;  %v1657_v50 = vadd.f32 1.0, %v3682_v48  ;;  %2585 = vmatmul.mubr.bf16.vlgmr.msra.gmra.mrb[0].mxu0 %v1901_v13  ;;  %v1781_v37 = vmul.f32 %v1653_v8, %v1269_v20 }
 0x21b   : > { %v1413_v28 = vmul.f32 0.70710677, %v4713_v33  ;;  %v1136_v30 = vpop.f32.mrb[79].mxu1  ;;  %v1658_v11 = vadd.f32 1.0, %v3684_v16  ;;  %v4725_v25 = vadd.f32 %v1134_v49, %v4631_v62  ;;  %v1782_v53 = vmul.f32 %v1654_v9, %v1270_v57 }
 0x21c   : > { %v1414_v1 = vmul.f32 0.70710677, %v4717_v23  ;;  %v1785_v40 = vmul.f32 %v1657_v50, %v1273_v63  ;;  %v4728_v60 = vadd.f32 %v1136_v30, %v4637_v18  ;;  %v1285_v49 = vmul.f32 0.5, %v4713_v33 }
 0x21d   : > { %3693 = verf.f32 %v1413_v28  ;;  %v1786_v19 = vmul.f32 %v1658_v11, %v1274_v29  ;;  %v1417_v43 = vmul.f32 0.70710677, %v4725_v25  ;;  %v1286_v28 = vmul.f32 0.5, %v4717_v23 }
 0x21e   : > { %3695 = verf.f32 %v1414_v1  ;;  %v1418_v56 = vmul.f32 0.70710677, %v4728_v60  ;;  %v1905_v6 = vpack.c.bf16 %v1785_v40, %v1781_v37  ;;  %v1289_v30 = vmul.f32 0.5, %v4725_v25 }
 0x21f   : > { %v3686_v39 = vpop.eup %3685  ;;  %3697 = verf.f32 %v1417_v43  ;;  %v1906_v47 = vpack.c.bf16 %v1786_v19, %v1782_v53  ;;  %v1290_v37 = vmul.f32 0.5, %v4728_v60 }
 0x220   : > { %v3688_v46 = vpop.eup %3687  ;;  %v1140_v42 = vpop.f32.mrb[80].mxu1  ;;  %v1661_v51 = vadd.f32 1.0, %v3686_v39  ;;  %3699 = verf.f32 %v1418_v56 }
 0x221   : > { %v4733_v54 = vadd.f32 %v1140_v42, %v4631_v62  ;;  %v1142_v15 = vpop.f32.mrb[81].mxu1  ;;  %v3690_v55 = vpop.eup %3689  ;;  %v1662_v5 = vadd.f32 1.0, %v3688_v46  ;;  %2594 = vmatprep.mubr.bf16.mxu0 %v1906_v47 }
 0x222   : > { %v4737_v24 = vadd.f32 %v1142_v15, %v4637_v18  ;;  %v1144_v61 = vpop.f32.mrb[82].mxu1  ;;  %v3692_v7 = vpop.eup %3691  ;;  %v1665_v26 = vadd.f32 1.0, %v3690_v55  ;;  %2595 = vmatmul.mubr.bf16.gmra.mrb[4].mxu0 %v1905_v6  ;;  %v1789_v10 = vmul.f32 %v1661_v51, %v1277_v31 }
 0x223   : > { %v1421_v2 = vmul.f32 0.70710677, %v4733_v54  ;;  %v1146_v45 = vpop.f32.mrb[83].mxu1  ;;  %v1666_v4 = vadd.f32 1.0, %v3692_v7  ;;  %v4745_v14 = vadd.f32 %v1144_v61, %v4631_v62  ;;  %v1790_v12 = vmul.f32 %v1662_v5, %v1278_v32 }
 0x224   : > { %v1422_v3 = vmul.f32 0.70710677, %v4737_v24  ;;  %v1793_v38 = vmul.f32 %v1665_v26, %v1281_v27  ;;  %v4748_v58 = vadd.f32 %v1146_v45, %v4637_v18  ;;  %v1293_v61 = vmul.f32 0.5, %v4733_v54 }
 0x225   : > { %3701 = verf.f32 %v1421_v2  ;;  %v1794_v21 = vmul.f32 %v1666_v4, %v1282_v35  ;;  %v1425_v13 = vmul.f32 0.70710677, %v4745_v14  ;;  %v1294_v2 = vmul.f32 0.5, %v4737_v24 }
 0x226   : > { %3703 = verf.f32 %v1422_v3  ;;  %v1426_v22 = vmul.f32 0.70710677, %v4748_v58  ;;  %v1909_v52 = vpack.c.bf16 %v1793_v38, %v1789_v10  ;;  %v1297_v45 = vmul.f32 0.5, %v4745_v14 }
 0x227   : > { %v3694_v44 = vpop.eup %3693  ;;  %3705 = verf.f32 %v1425_v13  ;;  %v1910_v8 = vpack.c.bf16 %v1794_v21, %v1790_v12  ;;  %v1298_v10 = vmul.f32 0.5, %v4748_v58 }
 0x228   : > { %v3696_v59 = vpop.eup %3695  ;;  %v1150_v0 = vpop.f32.mrb[84].mxu1  ;;  %v1669_v17 = vadd.f32 1.0, %v3694_v44  ;;  %3707 = verf.f32 %v1426_v22 }
 0x229   : > { %v4753_v48 = vadd.f32 %v1150_v0, %v4631_v62  ;;  %v1152_v20 = vpop.f32.mrb[85].mxu1  ;;  %v3698_v9 = vpop.eup %3697  ;;  %v1670_v16 = vadd.f32 1.0, %v3696_v59  ;;  %2604 = vmatprep.mubr.bf16.mxu0 %v1910_v8 }
 0x22a   : > { %v4757_v57 = vadd.f32 %v1152_v20, %v4637_v18  ;;  %v1154_v63 = vpop.f32.mrb[86].mxu1  ;;  %v3700_v50 = vpop.eup %3699  ;;  %v1673_v29 = vadd.f32 1.0, %v3698_v9  ;;  %2605 = vmatmul.mubr.bf16.gmra.mrb[8].mxu0 %v1909_v52  ;;  %v1797_v19 = vmul.f32 %v1669_v17, %v1285_v49 }
 0x22b   : > { %v1429_v11 = vmul.f32 0.70710677, %v4753_v48  ;;  %v1156_v1 = vpop.f32.mrb[87].mxu1  ;;  %v1674_v40 = vadd.f32 1.0, %v3700_v50  ;;  %v4765_v53 = vadd.f32 %v1154_v63, %v4631_v62  ;;  %v1798_v25 = vmul.f32 %v1670_v16, %v1286_v28 }
 0x22c   : > { %v1430_v33 = vmul.f32 0.70710677, %v4757_v57  ;;  %v1801_v43 = vmul.f32 %v1673_v29, %v1289_v30  ;;  %v4768_v23 = vadd.f32 %v1156_v1, %v4637_v18  ;;  %v1301_v63 = vmul.f32 0.5, %v4753_v48 }
 0x22d   : > { %3709 = verf.f32 %v1429_v11  ;;  %v1802_v39 = vmul.f32 %v1674_v40, %v1290_v37  ;;  %v1433_v56 = vmul.f32 0.70710677, %v4765_v53  ;;  %v1302_v11 = vmul.f32 0.5, %v4757_v57 }
 0x22e   : > { %3711 = verf.f32 %v1430_v33  ;;  %v1434_v60 = vmul.f32 0.70710677, %v4768_v23  ;;  %v1913_v46 = vpack.c.bf16 %v1801_v43, %v1797_v19  ;;  %v1305_v1 = vmul.f32 0.5, %v4765_v53 }
 0x22f   : > { %v3702_v6 = vpop.eup %3701  ;;  %3713 = verf.f32 %v1433_v56  ;;  %v1914_v51 = vpack.c.bf16 %v1802_v39, %v1798_v25  ;;  %v1306_v19 = vmul.f32 0.5, %v4768_v23 }
 0x230   : > { %v3704_v42 = vpop.eup %3703  ;;  %v1160_v47 = vpop.f32.mrb[88].mxu1  ;;  %v1677_v15 = vadd.f32 1.0, %v3702_v6  ;;  %3715 = verf.f32 %v1434_v60 }
 0x231   : > { %v4773_v55 = vadd.f32 %v1160_v47, %v4631_v62  ;;  %v1162_v31 = vpop.f32.mrb[89].mxu1  ;;  %v3706_v5 = vpop.eup %3705  ;;  %v1678_v7 = vadd.f32 1.0, %v3704_v42  ;;  %2614 = vmatprep.mubr.bf16.mxu0 %v1914_v51 }
 0x232   : > { %v4777_v32 = vadd.f32 %v1162_v31, %v4637_v18  ;;  %v1164_v27 = vpop.f32.mrb[90].mxu1  ;;  %v3708_v26 = vpop.eup %3707  ;;  %v1681_v35 = vadd.f32 1.0, %v3706_v5  ;;  %2615 = vmatmul.mubr.bf16.gmra.mrb[12].mxu0 %v1913_v46  ;;  %v1805_v21 = vmul.f32 %v1677_v15, %v1293_v61 }
 0x233   : > { %v1437_v4 = vmul.f32 0.70710677, %v4773_v55  ;;  %v1166_v3 = vpop.f32.mrb[91].mxu1  ;;  %v1682_v38 = vadd.f32 1.0, %v3708_v26  ;;  %v4785_v12 = vadd.f32 %v1164_v27, %v4631_v62  ;;  %v1806_v14 = vmul.f32 %v1678_v7, %v1294_v2 }
 0x234   : > { %v1438_v54 = vmul.f32 0.70710677, %v4777_v32  ;;  %v1809_v13 = vmul.f32 %v1681_v35, %v1297_v45  ;;  %v4788_v24 = vadd.f32 %v1166_v3, %v4637_v18  ;;  %v1309_v27 = vmul.f32 0.5, %v4773_v55 }
 0x235   : > { %3717 = verf.f32 %v1437_v4  ;;  %v1810_v44 = vmul.f32 %v1682_v38, %v1298_v10  ;;  %v1441_v22 = vmul.f32 0.70710677, %v4785_v12  ;;  %v1310_v4 = vmul.f32 0.5, %v4777_v32 }
 0x236   : > { %3719 = verf.f32 %v1438_v54  ;;  %v1442_v58 = vmul.f32 0.70710677, %v4788_v24  ;;  %v1917_v59 = vpack.c.bf16 %v1809_v13, %v1805_v21  ;;  %v1313_v3 = vmul.f32 0.5, %v4785_v12 }
 0x237   : > { %v3710_v52 = vpop.eup %3709  ;;  %3721 = verf.f32 %v1441_v22  ;;  %v1918_v17 = vpack.c.bf16 %v1810_v44, %v1806_v14  ;;  %v1314_v21 = vmul.f32 0.5, %v4788_v24 }
 0x238   : > { %v3712_v0 = vpop.eup %3711  ;;  %v1170_v8 = vpop.f32.mrb[92].mxu1  ;;  %v1685_v20 = vadd.f32 1.0, %v3710_v52  ;;  %3723 = verf.f32 %v1442_v58 }
 0x239   : > { %v4793_v9 = vadd.f32 %v1170_v8, %v4631_v62  ;;  %v1172_v49 = vpop.f32.mrb[93].mxu1  ;;  %v3714_v16 = vpop.eup %3713  ;;  %v1686_v50 = vadd.f32 1.0, %v3712_v0  ;;  %2624 = vmatprep.mubr.bf16.mxu0 %v1918_v17 }
 0x23a   : > { %v4797_v28 = vadd.f32 %v1172_v49, %v4637_v18  ;;  %v1174_v30 = vpop.f32.mrb[94].mxu1  ;;  %v3716_v29 = vpop.eup %3715  ;;  %v1689_v37 = vadd.f32 1.0, %v3714_v16  ;;  %2625 = vmatmul.mubr.bf16.gmra.mrb[16].mxu0 %v1917_v59  ;;  %v1813_v39 = vmul.f32 %v1685_v20, %v1301_v63 }
 0x23b   : > { %v1445_v40 = vmul.f32 0.70710677, %v4793_v9  ;;  %v1176_v33 = vpop.f32.mrb[95].mxu1  ;;  %v1690_v43 = vadd.f32 1.0, %v3716_v29  ;;  %v4805_v25 = vadd.f32 %v1174_v30, %v4631_v62  ;;  %v1814_v53 = vmul.f32 %v1686_v50, %v1302_v11 }
 0x23c   : > { %v1446_v48 = vmul.f32 0.70710677, %v4797_v28  ;;  %v1817_v56 = vmul.f32 %v1689_v37, %v1305_v1  ;;  %v4808_v57 = vadd.f32 %v1176_v33, %v4637_v18  ;;  %v1317_v30 = vmul.f32 0.5, %v4793_v9 }
 0x23d   : > { %3725 = verf.f32 %v1445_v40  ;;  %v1818_v6 = vmul.f32 %v1690_v43, %v1306_v19  ;;  %v1449_v60 = vmul.f32 0.70710677, %v4805_v25  ;;  %v1318_v40 = vmul.f32 0.5, %v4797_v28 }
 0x23e   : > { %3727 = verf.f32 %v1446_v48  ;;  %v1450_v23 = vmul.f32 0.70710677, %v4808_v57  ;;  %v1921_v42 = vpack.c.bf16 %v1817_v56, %v1813_v39  ;;  %v1321_v33 = vmul.f32 0.5, %v4805_v25 }
 0x23f   : > { %v3718_v46 = vpop.eup %3717  ;;  %3729 = verf.f32 %v1449_v60  ;;  %v1922_v15 = vpack.c.bf16 %v1818_v6, %v1814_v53  ;;  %v1322_v39 = vmul.f32 0.5, %v4808_v57 }
 0x240   : > { %v3720_v47 = vpop.eup %3719  ;;  %v1180_v51 = vpop.f32.mrb[96].mxu1  ;;  %v1693_v31 = vadd.f32 1.0, %v3718_v46  ;;  %3731 = verf.f32 %v1450_v23 }
 0x241   : > { %v4813_v5 = vadd.f32 %v1180_v51, %v4631_v62  ;;  %v1182_v61 = vpop.f32.mrb[97].mxu1  ;;  %v3722_v7 = vpop.eup %3721  ;;  %v1694_v26 = vadd.f32 1.0, %v3720_v47  ;;  %2634 = vmatprep.mubr.bf16.mxu0 %v1922_v15 }
 0x242   : > { %v4817_v2 = vadd.f32 %v1182_v61, %v4637_v18  ;;  %v1184_v45 = vpop.f32.mrb[98].mxu1  ;;  %v3724_v35 = vpop.eup %3723  ;;  %v1697_v10 = vadd.f32 1.0, %v3722_v7  ;;  %2635 = vmatmul.mubr.bf16.gmra.mrb[20].mxu0 %v1921_v42  ;;  %v1821_v44 = vmul.f32 %v1693_v31, %v1309_v27 }
 0x243   : > { %v1453_v38 = vmul.f32 0.70710677, %v4813_v5  ;;  %v1186_v54 = vpop.f32.mrb[99].mxu1  ;;  %v1698_v13 = vadd.f32 1.0, %v3724_v35  ;;  %v4825_v14 = vadd.f32 %v1184_v45, %v4631_v62  ;;  %v1822_v12 = vmul.f32 %v1694_v26, %v1310_v4 }
 0x244   : > { %v1454_v55 = vmul.f32 0.70710677, %v4817_v2  ;;  %v1825_v22 = vmul.f32 %v1697_v10, %v1313_v3  ;;  %v4828_v32 = vadd.f32 %v1186_v54, %v4637_v18  ;;  %v1325_v45 = vmul.f32 0.5, %v4813_v5 }
 0x245   : > { %3733 = verf.f32 %v1453_v38  ;;  %v1826_v52 = vmul.f32 %v1698_v13, %v1314_v21  ;;  %v1457_v58 = vmul.f32 0.70710677, %v4825_v14  ;;  %v1326_v38 = vmul.f32 0.5, %v4817_v2 }
 0x246   : > { %3735 = verf.f32 %v1454_v55  ;;  %v1458_v24 = vmul.f32 0.70710677, %v4828_v32  ;;  %v1925_v0 = vpack.c.bf16 %v1825_v22, %v1821_v44  ;;  %v1329_v54 = vmul.f32 0.5, %v4825_v14 }
 0x247   : > { %v3726_v59 = vpop.eup %3725  ;;  %3737 = verf.f32 %v1457_v58  ;;  %v1926_v20 = vpack.c.bf16 %v1826_v52, %v1822_v12  ;;  %v1330_v44 = vmul.f32 0.5, %v4828_v32 }
 0x248   : > { %v3728_v8 = vpop.eup %3727  ;;  %v1190_v17 = vpop.f32.mrb[100].mxu1  ;;  %v1701_v49 = vadd.f32 1.0, %v3726_v59  ;;  %3739 = verf.f32 %v1458_v24 }
 0x249   : > { %v4833_v16 = vadd.f32 %v1190_v17, %v4631_v62  ;;  %v1192_v63 = vpop.f32.mrb[101].mxu1  ;;  %v3730_v50 = vpop.eup %3729  ;;  %v1702_v29 = vadd.f32 1.0, %v3728_v8  ;;  %2644 = vmatprep.mubr.bf16.mxu0 %v1926_v20 }
 0x24a   : > { %v4837_v11 = vadd.f32 %v1192_v63, %v4637_v18  ;;  %v1194_v1 = vpop.f32.mrb[102].mxu1  ;;  %v3732_v37 = vpop.eup %3731  ;;  %v1705_v19 = vadd.f32 1.0, %v3730_v50  ;;  %2645 = vmatmul.mubr.bf16.gmra.mrb[24].mxu0 %v1925_v0  ;;  %v1829_v6 = vmul.f32 %v1701_v49, %v1317_v30 }
 0x24b   : > { %v1461_v43 = vmul.f32 0.70710677, %v4833_v16  ;;  %v1196_v48 = vpop.f32.mrb[103].mxu1  ;;  %v1706_v56 = vadd.f32 1.0, %v3732_v37  ;;  %v4845_v53 = vadd.f32 %v1194_v1, %v4631_v62  ;;  %v1830_v25 = vmul.f32 %v1702_v29, %v1318_v40 }
 0x24c   : > { %v1462_v9 = vmul.f32 0.70710677, %v4837_v11  ;;  %v1833_v60 = vmul.f32 %v1705_v19, %v1321_v33  ;;  %v4848_v28 = vadd.f32 %v1196_v48, %v4637_v18  ;;  %v1333_v1 = vmul.f32 0.5, %v4833_v16 }
 0x24d   : > { %3741 = verf.f32 %v1461_v43  ;;  %v1834_v46 = vmul.f32 %v1706_v56, %v1322_v39  ;;  %v1465_v23 = vmul.f32 0.70710677, %v4845_v53  ;;  %v1334_v43 = vmul.f32 0.5, %v4837_v11 }
 0x24e   : > { %3743 = verf.f32 %v1462_v9  ;;  %v1466_v57 = vmul.f32 0.70710677, %v4848_v28  ;;  %v1929_v47 = vpack.c.bf16 %v1833_v60, %v1829_v6  ;;  %v1337_v48 = vmul.f32 0.5, %v4845_v53 }
 0x24f   : > { %v3734_v42 = vpop.eup %3733  ;;  %3745 = verf.f32 %v1465_v23  ;;  %v1930_v31 = vpack.c.bf16 %v1834_v46, %v1830_v25  ;;  %v1338_v6 = vmul.f32 0.5, %v4848_v28 }
 0x250   : > { %v3736_v51 = vpop.eup %3735  ;;  %v1200_v15 = vpop.f32.mrb[104].mxu1  ;;  %v1709_v61 = vadd.f32 1.0, %v3734_v42  ;;  %3747 = verf.f32 %v1466_v57 }
 0x251   : > { %v4853_v7 = vadd.f32 %v1200_v15, %v4631_v62  ;;  %v1202_v27 = vpop.f32.mrb[105].mxu1  ;;  %v3738_v26 = vpop.eup %3737  ;;  %v1710_v35 = vadd.f32 1.0, %v3736_v51  ;;  %2654 = vmatprep.mubr.bf16.mxu0 %v1930_v31 }
 0x252   : > { %v4857_v4 = vadd.f32 %v1202_v27, %v4637_v18  ;;  %v1204_v3 = vpop.f32.mrb[106].mxu1  ;;  %v3740_v10 = vpop.eup %3739  ;;  %v1713_v21 = vadd.f32 1.0, %v3738_v26  ;;  %2655 = vmatmul.mubr.bf16.gmra.mrb[28].mxu0 %v1929_v47  ;;  %v1837_v52 = vmul.f32 %v1709_v61, %v1325_v45 }
 0x253   : > { %v1469_v13 = vmul.f32 0.70710677, %v4853_v7  ;;  %v1206_v55 = vpop.f32.mrb[107].mxu1  ;;  %v1714_v22 = vadd.f32 1.0, %v3740_v10  ;;  %v4865_v12 = vadd.f32 %v1204_v3, %v4631_v62  ;;  %v1838_v14 = vmul.f32 %v1710_v35, %v1326_v38 }
 0x254   : > { %v1470_v5 = vmul.f32 0.70710677, %v4857_v4  ;;  %v1841_v58 = vmul.f32 %v1713_v21, %v1329_v54  ;;  %v4868_v2 = vadd.f32 %v1206_v55, %v4637_v18  ;;  %v1341_v3 = vmul.f32 0.5, %v4853_v7 }
 0x255   : > { %3749 = verf.f32 %v1469_v13  ;;  %v1842_v59 = vmul.f32 %v1714_v22, %v1330_v44  ;;  %v1473_v24 = vmul.f32 0.70710677, %v4865_v12  ;;  %v1342_v13 = vmul.f32 0.5, %v4857_v4 }
 0x256   : > { %3751 = verf.f32 %v1470_v5  ;;  %v1474_v32 = vmul.f32 0.70710677, %v4868_v2  ;;  %v1933_v8 = vpack.c.bf16 %v1841_v58, %v1837_v52  ;;  %v1345_v55 = vmul.f32 0.5, %v4865_v12 }
 0x257   : > { %v3742_v0 = vpop.eup %3741  ;;  %3753 = verf.f32 %v1473_v24  ;;  %v1934_v49 = vpack.c.bf16 %v1842_v59, %v1838_v14  ;;  %v1346_v52 = vmul.f32 0.5, %v4868_v2 }
 0x258   : > { %v3744_v17 = vpop.eup %3743  ;;  %v1210_v20 = vpop.f32.mrb[108].mxu1  ;;  %v1717_v63 = vadd.f32 1.0, %v3742_v0  ;;  %3755 = verf.f32 %v1474_v32 }
 0x259   : > { %v4873_v50 = vadd.f32 %v1210_v20, %v4631_v62  ;;  %v1212_v30 = vpop.f32.mrb[109].mxu1  ;;  %v3746_v29 = vpop.eup %3745  ;;  %v1718_v37 = vadd.f32 1.0, %v3744_v17  ;;  %2664 = vmatprep.mubr.bf16.mxu0 %v1934_v49 }
 0x25a   : > { %v4877_v40 = vadd.f32 %v1212_v30, %v4637_v18  ;;  %v1214_v33 = vpop.f32.mrb[110].mxu1  ;;  %v3748_v19 = vpop.eup %3747  ;;  %v1721_v39 = vadd.f32 1.0, %v3746_v29  ;;  %2665 = vmatmul.mubr.bf16.gmra.mrb[32].mxu0 %v1933_v8  ;;  %v1845_v46 = vmul.f32 %v1717_v63, %v1333_v1 }
 0x25b   : > { %v1477_v56 = vmul.f32 0.70710677, %v4873_v50  ;;  %v1216_v9 = vpop.f32.mrb[111].mxu1  ;;  %v1722_v60 = vadd.f32 1.0, %v3748_v19  ;;  %v4885_v25 = vadd.f32 %v1214_v33, %v4631_v62  ;;  %v1846_v53 = vmul.f32 %v1718_v37, %v1334_v43 }
 0x25c   : > { %v1478_v16 = vmul.f32 0.70710677, %v4877_v40  ;;  %v1849_v23 = vmul.f32 %v1721_v39, %v1337_v48  ;;  %v4888_v11 = vadd.f32 %v1216_v9, %v4637_v18  ;;  %v1349_v33 = vmul.f32 0.5, %v4873_v50 }
 0x25d   : > { %3757 = verf.f32 %v1477_v56  ;;  %v1850_v42 = vmul.f32 %v1722_v60, %v1338_v6  ;;  %v1481_v57 = vmul.f32 0.70710677, %v4885_v25  ;;  %v1350_v56 = vmul.f32 0.5, %v4877_v40 }
 0x25e   : > { %3759 = verf.f32 %v1478_v16  ;;  %v1482_v28 = vmul.f32 0.70710677, %v4888_v11  ;;  %v1937_v51 = vpack.c.bf16 %v1849_v23, %v1845_v46  ;;  %v1353_v9 = vmul.f32 0.5, %v4885_v25 }
 0x25f   : > { %v3750_v47 = vpop.eup %3749  ;;  %3761 = verf.f32 %v1481_v57  ;;  %v1938_v61 = vpack.c.bf16 %v1850_v42, %v1846_v53  ;;  %v1354_v46 = vmul.f32 0.5, %v4888_v11 }
 0x260   : > { %v3752_v15 = vpop.eup %3751  ;;  %v1220_v31 = vpop.f32.mrb[112].mxu1  ;;  %v1725_v27 = vadd.f32 1.0, %v3750_v47  ;;  %3763 = verf.f32 %v1482_v28 }
 0x261   : > { %v4893_v26 = vadd.f32 %v1220_v31, %v4631_v62  ;;  %v1222_v45 = vpop.f32.mrb[113].mxu1  ;;  %v3754_v35 = vpop.eup %3753  ;;  %v1726_v10 = vadd.f32 1.0, %v3752_v15  ;;  %2674 = vmatprep.mubr.bf16.mxu0 %v1938_v61 }
 0x262   : > { %v4897_v38 = vadd.f32 %v1222_v45, %v4637_v18  ;;  %v1224_v54 = vpop.f32.mrb[114].mxu1  ;;  %v3756_v21 = vpop.eup %3755  ;;  %v1729_v44 = vadd.f32 1.0, %v3754_v35  ;;  %2675 = vmatmul.mubr.bf16.gmra.mrb[36].mxu0 %v1937_v51  ;;  %v1853_v59 = vmul.f32 %v1725_v27, %v1341_v3 }
 0x263   : > { %v1485_v22 = vmul.f32 0.70710677, %v4893_v26  ;;  %v1226_v5 = vpop.f32.mrb[115].mxu1  ;;  %v1730_v58 = vadd.f32 1.0, %v3756_v21  ;;  %v4905_v14 = vadd.f32 %v1224_v54, %v4631_v62  ;;  %v1854_v12 = vmul.f32 %v1726_v10, %v1342_v13 }
 0x264   : > { %v1486_v7 = vmul.f32 0.70710677, %v4897_v38  ;;  %v1857_v24 = vmul.f32 %v1729_v44, %v1345_v55  ;;  %v4908_v4 = vadd.f32 %v1226_v5, %v4637_v18  ;;  %v1357_v54 = vmul.f32 0.5, %v4893_v26 }
 0x265   : > { %3765 = verf.f32 %v1485_v22  ;;  %v1858_v0 = vmul.f32 %v1730_v58, %v1346_v52  ;;  %v1489_v32 = vmul.f32 0.70710677, %v4905_v14  ;;  %v1358_v22 = vmul.f32 0.5, %v4897_v38 }
 0x266   : > { %3767 = verf.f32 %v1486_v7  ;;  %v1490_v2 = vmul.f32 0.70710677, %v4908_v4  ;;  %v1941_v17 = vpack.c.bf16 %v1857_v24, %v1853_v59  ;;  %v1361_v5 = vmul.f32 0.5, %v4905_v14 }
 0x267   : > { %v3758_v8 = vpop.eup %3757  ;;  %3769 = verf.f32 %v1489_v32  ;;  %v1942_v63 = vpack.c.bf16 %v1858_v0, %v1854_v12  ;;  %v1362_v59 = vmul.f32 0.5, %v4908_v4 }
 0x268   : > { %v3760_v20 = vpop.eup %3759  ;;  %v1230_v49 = vpop.f32.mrb[116].mxu1  ;;  %v1733_v30 = vadd.f32 1.0, %v3758_v8  ;;  %3771 = verf.f32 %v1490_v2 }
 0x269   : > { %v4913_v29 = vadd.f32 %v1230_v49, %v4631_v62  ;;  %v1232_v1 = vpop.f32.mrb[117].mxu1  ;;  %v3762_v37 = vpop.eup %3761  ;;  %v1734_v19 = vadd.f32 1.0, %v3760_v20  ;;  %2684 = vmatprep.mubr.bf16.mxu0 %v1942_v63 }
 0x26a   : > { %v4917_v43 = vadd.f32 %v1232_v1, %v4637_v18  ;;  %v1234_v48 = vpop.f32.mrb[118].mxu1  ;;  %v3764_v39 = vpop.eup %3763  ;;  %v1737_v6 = vadd.f32 1.0, %v3762_v37  ;;  %2685 = vmatmul.mubr.bf16.gmra.mrb[40].mxu0 %v1941_v17  ;;  %v1861_v42 = vmul.f32 %v1733_v30, %v1349_v33 }
 0x26b   : > { %v1493_v60 = vmul.f32 0.70710677, %v4913_v29  ;;  %v1236_v16 = vpop.f32.mrb[119].mxu1  ;;  %v1738_v23 = vadd.f32 1.0, %v3764_v39  ;;  %v4925_v53 = vadd.f32 %v1234_v48, %v4631_v62  ;;  %v1862_v25 = vmul.f32 %v1734_v19, %v1350_v56 }
 0x26c   : > { %v1494_v50 = vmul.f32 0.70710677, %v4917_v43  ;;  %v1865_v57 = vmul.f32 %v1737_v6, %v1353_v9  ;;  %v4928_v40 = vadd.f32 %v1236_v16, %v4637_v18  ;;  %v1365_v48 = vmul.f32 0.5, %v4913_v29 }
 0x26d   : > { %3773 = verf.f32 %v1493_v60  ;;  %v1866_v47 = vmul.f32 %v1738_v23, %v1354_v46  ;;  %v1497_v28 = vmul.f32 0.70710677, %v4925_v53  ;;  %v1366_v60 = vmul.f32 0.5, %v4917_v43 }
 0x26e   : > { %3775 = verf.f32 %v1494_v50  ;;  %v1498_v11 = vmul.f32 0.70710677, %v4928_v40  ;;  %v1945_v15 = vpack.c.bf16 %v1865_v57, %v1861_v42  ;;  %v1369_v16 = vmul.f32 0.5, %v4925_v53 }
 0x26f   : > { %v3766_v51 = vpop.eup %3765  ;;  %3777 = verf.f32 %v1497_v28  ;;  %v1946_v27 = vpack.c.bf16 %v1866_v47, %v1862_v25  ;;  %v1370_v42 = vmul.f32 0.5, %v4928_v40 }
 0x270   : > { %v3768_v31 = vpop.eup %3767  ;;  %v1240_v61 = vpop.f32.mrb[120].mxu1  ;;  %v1741_v45 = vadd.f32 1.0, %v3766_v51  ;;  %3779 = verf.f32 %v1498_v11 }
 0x271   : > { %v4933_v35 = vadd.f32 %v1240_v61, %v4631_v62  ;;  %v1242_v3 = vpop.f32.mrb[121].mxu1  ;;  %v3770_v10 = vpop.eup %3769  ;;  %v1742_v21 = vadd.f32 1.0, %v3768_v31  ;;  %2694 = vmatprep.mubr.bf16.mxu0 %v1946_v27 }
 0x272   : > { %v4937_v13 = vadd.f32 %v1242_v3, %v4637_v18  ;;  %v1244_v55 = vpop.f32.mrb[122].mxu1  ;;  %v3772_v44 = vpop.eup %3771  ;;  %v1745_v52 = vadd.f32 1.0, %v3770_v10  ;;  %2695 = vmatmul.mubr.bf16.gmra.mrb[44].mxu0 %v1945_v15  ;;  %v1869_v0 = vmul.f32 %v1741_v45, %v1357_v54 }
 0x273   : > { %v1501_v58 = vmul.f32 0.70710677, %v4933_v35  ;;  %v1246_v7 = vpop.f32.mrb[123].mxu1  ;;  %v1746_v24 = vadd.f32 1.0, %v3772_v44  ;;  %v1245_v12 = vadd.f32 %v1244_v55, %v4631_v62  ;;  %v1870_v38 = vmul.f32 %v1742_v21, %v1358_v22 }
 0x274   : > { %v1502_v26 = vmul.f32 0.70710677, %v4937_v13  ;;  %v1873_v32 = vmul.f32 %v1745_v52, %v1361_v5  ;;  %v1247_v8 = vadd.f32 %v1246_v7, %v4637_v18  ;;  %v1373_v54 = vmul.f32 0.5, %v4933_v35 }
 0x275   : > { %3781 = verf.f32 %v1501_v58  ;;  %v1874_v2 = vmul.f32 %v1746_v24, %v1362_v59  ;;  %v1505_v14 = vmul.f32 0.70710677, %v1245_v12  ;;  %v1377_v21 = vmul.f32 0.5, %v1245_v12 }
 0x276   : > { %3783 = verf.f32 %v1502_v26  ;;  %v1506_v20 = vmul.f32 0.70710677, %v1247_v8  ;;  %v1949_v49 = vpack.c.bf16 %v1873_v32, %v1869_v0  ;;  %v1374_v55 = vmul.f32 0.5, %v4937_v13 }
 0x277   : > { %v3774_v17 = vpop.eup %3773  ;;  %3785 = verf.f32 %v1505_v14  ;;  %v1950_v30 = vpack.c.bf16 %v1874_v2, %v1870_v38  ;;  %v1378_v44 = vmul.f32 0.5, %v1247_v8 }
 0x278   : > { %v3776_v63 = vpop.eup %3775  ;;  %v1250_v4 = vpop.f32.mrb[124].mxu1  ;;  %v1749_v1 = vadd.f32 1.0, %v3774_v17  ;;  %3787 = verf.f32 %v1506_v20 }
 0x279   : > { %v1251_v37 = vadd.f32 %v1250_v4, %v4631_v62  ;;  %v1252_v33 = vpop.f32.mrb[125].mxu1  ;;  %v3778_v19 = vpop.eup %3777  ;;  %v1750_v39 = vadd.f32 1.0, %v3776_v63  ;;  %2704 = vmatprep.mubr.bf16.mxu0 %v1950_v30 }
 0x27a   : > { %v1253_v56 = vadd.f32 %v1252_v33, %v4637_v18  ;;  %v1254_v9 = vpop.f32.mrb[126].mxu1  ;;  %v3780_v6 = vpop.eup %3779  ;;  %v1753_v46 = vadd.f32 1.0, %v3778_v19  ;;  %2705 = vmatmul.mubr.bf16.gmra.mrb[48].mxu0 %v1949_v49  ;;  %v1877_v47 = vmul.f32 %v1749_v1, %v1365_v48  ;;  %v2027_v19 = vld [vmem:[%s5152_s4] sm:$0x3] }
 0x27b   : > { %v1509_v23 = vmul.f32 0.70710677, %v1251_v37  ;;  %v1256_v50 = vpop.f32.mrb[127].mxu1  ;;  %v1754_v57 = vadd.f32 1.0, %v3780_v6  ;;  %v1255_v29 = vadd.f32 %v1254_v9, %v4631_v62  ;;  %v1878_v11 = vmul.f32 %v1750_v39, %v1366_v60 }
 0x27c   : > { %v1510_v25 = vmul.f32 0.70710677, %v1253_v56  ;;  %v1881_v28 = vmul.f32 %v1753_v46, %v1369_v16  ;;  %v1257_v51 = vadd.f32 %v1256_v50, %v4637_v18  ;;  %v1381_v12 = vmul.f32 0.5, %v1251_v37 }
 0x27d   : > { %3789 = verf.f32 %v1509_v23  ;;  %v1882_v15 = vmul.f32 %v1754_v57, %v1370_v42  ;;  %v1513_v43 = vmul.f32 0.70710677, %v1255_v29  ;;  %v1385_v14 = vmul.f32 0.5, %v1255_v29 }
 0x27e   : > { %3791 = verf.f32 %v1510_v25  ;;  %v1514_v31 = vmul.f32 0.70710677, %v1257_v51  ;;  %v1953_v61 = vpack.c.bf16 %v1881_v28, %v1877_v47  ;;  %v1382_v13 = vmul.f32 0.5, %v1253_v56 }
 0x27f   : > { %v3782_v53 = vpop.eup %3781  ;;  %3793 = verf.f32 %v1513_v43  ;;  %v1954_v45 = vpack.c.bf16 %v1882_v15, %v1878_v11  ;;  %v1386_v8 = vmul.f32 0.5, %v1257_v51  ;;  %v4962_v37 = vrot.slane %v2027_v19, %v375_v36 }
 0x280   : > { %v3784_v27 = vpop.eup %3783  ;;  %v1757_v40 = vadd.f32 1.0, %v3782_v53  ;;  %3795 = verf.f32 %v1514_v31  ;;  %v4966_v48 = vrot.slane %v2027_v19, %v379_v41 }
 0x281   : > { %v3786_v3 = vpop.eup %3785  ;;  %v1758_v10 = vadd.f32 1.0, %v3784_v27  ;;  %2714 = vmatprep.mubr.bf16.mxu0 %v1954_v45 }
 0x282   : > { %v3788_v62 = vpop.eup %3787  ;;  %v1761_v18 = vadd.f32 1.0, %v3786_v3  ;;  %2715 = vmatmul.mubr.bf16.gmra.mrb[52].mxu0 %v1953_v61  ;;  %v1885_v5 = vmul.f32 %v1757_v40, %v1373_v54 }
 0x283   : > { %v1762_v22 = vadd.f32 1.0, %v3788_v62  ;;  %v1886_v58 = vmul.f32 %v1758_v10, %v1374_v55 }
 0x284   : > { %v1889_v52 = vmul.f32 %v1761_v18, %v1377_v21 }
 0x285   : > { %v1890_v7 = vmul.f32 %v1762_v22, %v1378_v44 }
 0x286   : > { %v1957_v24 = vpack.c.bf16 %v1889_v52, %v1885_v5 }
 0x287   : > { %v3790_v59 = vpop.eup %3789  ;;  %v1958_v0 = vpack.c.bf16 %v1890_v7, %v1886_v58 }
 0x288   : > { %v3792_v26 = vpop.eup %3791  ;;  %v1765_v32 = vadd.f32 1.0, %v3790_v59 }
 0x289   : > { %v3794_v38 = vpop.eup %3793  ;;  %v1766_v2 = vadd.f32 1.0, %v3792_v26  ;;  %2724 = vmatprep.mubr.bf16.mxu0 %v1958_v0 }
 0x28a   : > { %v3796_v35 = vpop.eup %3795  ;;  %v1769_v17 = vadd.f32 1.0, %v3794_v38  ;;  %2725 = vmatmul.mubr.bf16.gmra.mrb[56].mxu0 %v1957_v24  ;;  %v1893_v49 = vmul.f32 %v1765_v32, %v1381_v12 }
 0x28b   : > { %v1770_v20 = vadd.f32 1.0, %v3796_v35  ;;  %v1894_v4 = vmul.f32 %v1766_v2, %v1382_v13 }
 0x28c   : > { %v1897_v63 = vmul.f32 %v1769_v17, %v1385_v14 }
 0x28d   : > { %v1898_v30 = vmul.f32 %v1770_v20, %v1386_v8 }
 0x28e   : > { %v1961_v1 = vpack.c.bf16 %v1897_v63, %v1893_v49 }
 0x28f   : > { %v1962_v33 = vpack.c.bf16 %v1898_v30, %v1894_v4 }
 0x291   : > { %2734 = vmatprep.mubr.bf16.mxu0 %v1962_v33 }
 0x292   : > { %2735 = vmatmul.mubr.bf16.gmra.mrb[60].mxu0 %v1961_v1 }
 0x2ed   : > { %v2586_v39 = vpop.f32.mrb[0].mxu0 }
 0x2ee   : > { %v3100_v56 = vadd.f32 %v2586_v39, %v4962_v37  ;;  %v2588_v9 = vpop.f32.mrb[1].mxu0 }
 0x2ef   : > { %v3101_v6 = vadd.f32 %v2588_v9, %v4966_v48  ;;  %v2590_v60 = vpop.f32.mrb[2].mxu0 }
 0x2f0   : > { %2745 = vst [vmem:[%s4970_s15] sm:$0xff] %v3100_v56  ;;  %v3102_v34 = vadd.f32 %v2590_v60, %v4962_v37  ;;  %v2592_v36 = vpop.f32.mrb[3].mxu0 }
 0x2f1   : > { %2746 = vst [vmem:[%s4970_s15 + $0x8] sm:$0xff] %v3101_v6  ;;  %v3103_v41 = vadd.f32 %v2592_v36, %v4966_v48 }
 0x2f2   : > { %2747 = vst [vmem:[%s4970_s15 + $0x10] sm:$0xff] %v3102_v34 }
 0x2f3   : > { %2748 = vst [vmem:[%s4970_s15 + $0x18] sm:$0xff] %v3103_v41 }
 0x2f5   : > { %v2596_v16 = vpop.f32.mrb[4].mxu0 }
 0x2f6   : > { %v3104_v46 = vadd.f32 %v2596_v16, %v4962_v37  ;;  %v2598_v23 = vpop.f32.mrb[5].mxu0 }
 0x2f7   : > { %v3105_v50 = vadd.f32 %v2598_v23, %v4966_v48  ;;  %v2600_v42 = vpop.f32.mrb[6].mxu0 }
 0x2f8   : > { %2749 = vst [vmem:[%s4970_s15 + $0x20] sm:$0xff] %v3104_v46  ;;  %v3106_v57 = vadd.f32 %v2600_v42, %v4962_v37  ;;  %v2602_v25 = vpop.f32.mrb[7].mxu0 }
 0x2f9   : > { %2750 = vst [vmem:[%s4970_s15 + $0x28] sm:$0xff] %v3105_v50  ;;  %v3107_v29 = vadd.f32 %v2602_v25, %v4966_v48 }
 0x2fa   : > { %2751 = vst [vmem:[%s4970_s15 + $0x30] sm:$0xff] %v3106_v57 }
 0x2fb   : > { %2752 = vst [vmem:[%s4970_s15 + $0x38] sm:$0xff] %v3107_v29 }
 0x2fd   : > { %v2606_v47 = vpop.f32.mrb[8].mxu0 }
 0x2fe   : > { %v3108_v28 = vadd.f32 %v2606_v47, %v4962_v37  ;;  %v2608_v51 = vpop.f32.mrb[9].mxu0 }
 0x2ff   : > { %v3109_v11 = vadd.f32 %v2608_v51, %v4966_v48  ;;  %v2610_v15 = vpop.f32.mrb[10].mxu0 }
 0x300   : > { %2753 = vst [vmem:[%s4970_s15 + $0x40] sm:$0xff] %v3108_v28  ;;  %v3110_v43 = vadd.f32 %v2610_v15, %v4962_v37  ;;  %v2612_v53 = vpop.f32.mrb[11].mxu0 }
 0x301   : > { %2754 = vst [vmem:[%s4970_s15 + $0x48] sm:$0xff] %v3109_v11  ;;  %v3111_v31 = vadd.f32 %v2612_v53, %v4966_v48 }
 0x302   : > { %2755 = vst [vmem:[%s4970_s15 + $0x50] sm:$0xff] %v3110_v43 }
 0x303   : > { %2756 = vst [vmem:[%s4970_s15 + $0x58] sm:$0xff] %v3111_v31 }
 0x305   : > { %v2616_v61 = vpop.f32.mrb[12].mxu0 }
 0x306   : > { %v3112_v27 = vadd.f32 %v2616_v61, %v4962_v37  ;;  %v2618_v45 = vpop.f32.mrb[13].mxu0 }
 0x307   : > { %v3113_v40 = vadd.f32 %v2618_v45, %v4966_v48  ;;  %v2620_v3 = vpop.f32.mrb[14].mxu0 }
 0x308   : > { %2757 = vst [vmem:[%s4970_s15 + $0x60] sm:$0xff] %v3112_v27  ;;  %v3114_v10 = vadd.f32 %v2620_v3, %v4962_v37  ;;  %v2622_v62 = vpop.f32.mrb[15].mxu0 }
 0x309   : > { %2758 = vst [vmem:[%s4970_s15 + $0x68] sm:$0xff] %v3113_v40  ;;  %v3115_v54 = vadd.f32 %v2622_v62, %v4966_v48 }
 0x30a   : > { %2759 = vst [vmem:[%s4970_s15 + $0x70] sm:$0xff] %v3114_v10 }
 0x30b   : > { %2760 = vst [vmem:[%s4970_s15 + $0x78] sm:$0xff] %v3115_v54 }
 0x30d   : > { %v2626_v21 = vpop.f32.mrb[16].mxu0 }
 0x30e   : > { %v3116_v18 = vadd.f32 %v2626_v21, %v4962_v37  ;;  %v2628_v55 = vpop.f32.mrb[17].mxu0 }
 0x30f   : > { %v3117_v44 = vadd.f32 %v2628_v55, %v4966_v48  ;;  %v2630_v22 = vpop.f32.mrb[18].mxu0 }
 0x310   : > { %2761 = vst [vmem:[%s4970_s15 + $0x80] sm:$0xff] %v3116_v18  ;;  %v3118_v5 = vadd.f32 %v2630_v22, %v4962_v37  ;;  %v2632_v52 = vpop.f32.mrb[19].mxu0 }
 0x311   : > { %2762 = vst [vmem:[%s4970_s15 + $0x88] sm:$0xff] %v3117_v44  ;;  %v3119_v58 = vadd.f32 %v2632_v52, %v4966_v48 }
 0x312   : > { %2763 = vst [vmem:[%s4970_s15 + $0x90] sm:$0xff] %v3118_v5 }
 0x313   : > { %2764 = vst [vmem:[%s4970_s15 + $0x98] sm:$0xff] %v3119_v58 }
 0x315   : > { %v2636_v7 = vpop.f32.mrb[20].mxu0 }
 0x316   : > { %v3120_v59 = vadd.f32 %v2636_v7, %v4962_v37  ;;  %v2638_v24 = vpop.f32.mrb[21].mxu0 }
 0x317   : > { %v3121_v26 = vadd.f32 %v2638_v24, %v4966_v48  ;;  %v2640_v0 = vpop.f32.mrb[22].mxu0 }
 0x318   : > { %2765 = vst [vmem:[%s4970_s15 + $0xa0] sm:$0xff] %v3120_v59  ;;  %v3122_v32 = vadd.f32 %v2640_v0, %v4962_v37  ;;  %v2642_v38 = vpop.f32.mrb[23].mxu0 }
 0x319   : > { %2766 = vst [vmem:[%s4970_s15 + $0xa8] sm:$0xff] %v3121_v26  ;;  %v3123_v2 = vadd.f32 %v2642_v38, %v4966_v48 }
 0x31a   : > { %2767 = vst [vmem:[%s4970_s15 + $0xb0] sm:$0xff] %v3122_v32 }
 0x31b   : > { %2768 = vst [vmem:[%s4970_s15 + $0xb8] sm:$0xff] %v3123_v2 }
 0x31d   : > { %v2646_v35 = vpop.f32.mrb[24].mxu0 }
 0x31e   : > { %v3124_v12 = vadd.f32 %v2646_v35, %v4962_v37  ;;  %v2648_v14 = vpop.f32.mrb[25].mxu0 }
 0x31f   : > { %v3125_v17 = vadd.f32 %v2648_v14, %v4966_v48  ;;  %v2650_v13 = vpop.f32.mrb[26].mxu0 }
 0x320   : > { %2769 = vst [vmem:[%s4970_s15 + $0xc0] sm:$0xff] %v3124_v12  ;;  %v3126_v8 = vadd.f32 %v2650_v13, %v4962_v37  ;;  %v2652_v20 = vpop.f32.mrb[27].mxu0 }
 0x321   : > { %2770 = vst [vmem:[%s4970_s15 + $0xc8] sm:$0xff] %v3125_v17  ;;  %v3127_v49 = vadd.f32 %v2652_v20, %v4966_v48 }
 0x322   : > { %2771 = vst [vmem:[%s4970_s15 + $0xd0] sm:$0xff] %v3126_v8 }
 0x323   : > { %2772 = vst [vmem:[%s4970_s15 + $0xd8] sm:$0xff] %v3127_v49 }
 0x325   : > { %v2656_v63 = vpop.f32.mrb[28].mxu0 }
 0x326   : > { %v3128_v4 = vadd.f32 %v2656_v63, %v4962_v37  ;;  %v2658_v30 = vpop.f32.mrb[29].mxu0 }
 0x327   : > { %v3129_v1 = vadd.f32 %v2658_v30, %v4966_v48  ;;  %v2660_v33 = vpop.f32.mrb[30].mxu0 }
 0x328   : > { %2773 = vst [vmem:[%s4970_s15 + $0xe0] sm:$0xff] %v3128_v4  ;;  %v3130_v19 = vadd.f32 %v2660_v33, %v4962_v37  ;;  %v2662_v39 = vpop.f32.mrb[31].mxu0 }
 0x329   : > { %2774 = vst [vmem:[%s4970_s15 + $0xe8] sm:$0xff] %v3129_v1  ;;  %v3131_v56 = vadd.f32 %v2662_v39, %v4966_v48 }
 0x32a   : > { %2775 = vst [vmem:[%s4970_s15 + $0xf0] sm:$0xff] %v3130_v19 }
 0x32b   : > { %2776 = vst [vmem:[%s4970_s15 + $0xf8] sm:$0xff] %v3131_v56 }
 0x32d   : > { %v2666_v9 = vpop.f32.mrb[32].mxu0 }
 0x32e   : > { %v3132_v6 = vadd.f32 %v2666_v9, %v4962_v37  ;;  %v2668_v60 = vpop.f32.mrb[33].mxu0 }
 0x32f   : > { %v3133_v34 = vadd.f32 %v2668_v60, %v4966_v48  ;;  %v2670_v36 = vpop.f32.mrb[34].mxu0 }
 0x330   : > { %2777 = vst [vmem:[%s4970_s15 + $0x100] sm:$0xff] %v3132_v6  ;;  %v3134_v41 = vadd.f32 %v2670_v36, %v4962_v37  ;;  %v2672_v16 = vpop.f32.mrb[35].mxu0 }
 0x331   : > { %2778 = vst [vmem:[%s4970_s15 + $0x108] sm:$0xff] %v3133_v34  ;;  %v3135_v46 = vadd.f32 %v2672_v16, %v4966_v48 }
 0x332   : > { %2779 = vst [vmem:[%s4970_s15 + $0x110] sm:$0xff] %v3134_v41 }
 0x333   : > { %2780 = vst [vmem:[%s4970_s15 + $0x118] sm:$0xff] %v3135_v46 }
 0x335   : > { %v2676_v23 = vpop.f32.mrb[36].mxu0 }
 0x336   : > { %v3136_v50 = vadd.f32 %v2676_v23, %v4962_v37  ;;  %v2678_v42 = vpop.f32.mrb[37].mxu0 }
 0x337   : > { %v3137_v57 = vadd.f32 %v2678_v42, %v4966_v48  ;;  %v2680_v25 = vpop.f32.mrb[38].mxu0 }
 0x338   : > { %2781 = vst [vmem:[%s4970_s15 + $0x120] sm:$0xff] %v3136_v50  ;;  %v3138_v29 = vadd.f32 %v2680_v25, %v4962_v37  ;;  %v2682_v47 = vpop.f32.mrb[39].mxu0 }
 0x339   : > { %2782 = vst [vmem:[%s4970_s15 + $0x128] sm:$0xff] %v3137_v57  ;;  %v3139_v28 = vadd.f32 %v2682_v47, %v4966_v48 }
 0x33a   : > { %2783 = vst [vmem:[%s4970_s15 + $0x130] sm:$0xff] %v3138_v29 }
 0x33b   : > { %2784 = vst [vmem:[%s4970_s15 + $0x138] sm:$0xff] %v3139_v28 }
 0x33d   : > { %v2686_v51 = vpop.f32.mrb[40].mxu0 }
 0x33e   : > { %v3140_v11 = vadd.f32 %v2686_v51, %v4962_v37  ;;  %v2688_v15 = vpop.f32.mrb[41].mxu0 }
 0x33f   : > { %v3141_v43 = vadd.f32 %v2688_v15, %v4966_v48  ;;  %v2690_v53 = vpop.f32.mrb[42].mxu0 }
 0x340   : > { %2785 = vst [vmem:[%s4970_s15 + $0x140] sm:$0xff] %v3140_v11  ;;  %v3142_v31 = vadd.f32 %v2690_v53, %v4962_v37  ;;  %v2692_v61 = vpop.f32.mrb[43].mxu0 }
 0x341   : > { %2786 = vst [vmem:[%s4970_s15 + $0x148] sm:$0xff] %v3141_v43  ;;  %v3143_v27 = vadd.f32 %v2692_v61, %v4966_v48 }
 0x342   : > { %2787 = vst [vmem:[%s4970_s15 + $0x150] sm:$0xff] %v3142_v31 }
 0x343   : > { %2788 = vst [vmem:[%s4970_s15 + $0x158] sm:$0xff] %v3143_v27 }
 0x345   : > { %v2696_v45 = vpop.f32.mrb[44].mxu0 }
 0x346   : > { %v3144_v40 = vadd.f32 %v2696_v45, %v4962_v37  ;;  %v2698_v3 = vpop.f32.mrb[45].mxu0 }
 0x347   : > { %v3145_v10 = vadd.f32 %v2698_v3, %v4966_v48  ;;  %v2700_v62 = vpop.f32.mrb[46].mxu0 }
 0x348   : > { %2789 = vst [vmem:[%s4970_s15 + $0x160] sm:$0xff] %v3144_v40  ;;  %v3146_v54 = vadd.f32 %v2700_v62, %v4962_v37  ;;  %v2702_v21 = vpop.f32.mrb[47].mxu0 }
 0x349   : > { %2790 = vst [vmem:[%s4970_s15 + $0x168] sm:$0xff] %v3145_v10  ;;  %v3147_v18 = vadd.f32 %v2702_v21, %v4966_v48 }
 0x34a   : > { %2791 = vst [vmem:[%s4970_s15 + $0x170] sm:$0xff] %v3146_v54 }
 0x34b   : > { %2792 = vst [vmem:[%s4970_s15 + $0x178] sm:$0xff] %v3147_v18 }
 0x34d   : > { %v2706_v55 = vpop.f32.mrb[48].mxu0 }
 0x34e   : > { %v3148_v44 = vadd.f32 %v2706_v55, %v4962_v37  ;;  %v2708_v22 = vpop.f32.mrb[49].mxu0 }
 0x34f   : > { %v3149_v5 = vadd.f32 %v2708_v22, %v4966_v48  ;;  %v2710_v52 = vpop.f32.mrb[50].mxu0 }
 0x350   : > { %2793 = vst [vmem:[%s4970_s15 + $0x180] sm:$0xff] %v3148_v44  ;;  %v3150_v58 = vadd.f32 %v2710_v52, %v4962_v37  ;;  %v2712_v7 = vpop.f32.mrb[51].mxu0 }
 0x351   : > { %2794 = vst [vmem:[%s4970_s15 + $0x188] sm:$0xff] %v3149_v5  ;;  %v3151_v59 = vadd.f32 %v2712_v7, %v4966_v48 }
 0x352   : > { %2795 = vst [vmem:[%s4970_s15 + $0x190] sm:$0xff] %v3150_v58 }
 0x353   : > { %2796 = vst [vmem:[%s4970_s15 + $0x198] sm:$0xff] %v3151_v59 }
 0x355   : > { %v2716_v24 = vpop.f32.mrb[52].mxu0 }
 0x356   : > { %v3152_v26 = vadd.f32 %v2716_v24, %v4962_v37  ;;  %v2718_v0 = vpop.f32.mrb[53].mxu0 }
 0x357   : > { %v3153_v32 = vadd.f32 %v2718_v0, %v4966_v48  ;;  %v2720_v38 = vpop.f32.mrb[54].mxu0 }
 0x358   : > { %2797 = vst [vmem:[%s4970_s15 + $0x1a0] sm:$0xff] %v3152_v26  ;;  %v3154_v2 = vadd.f32 %v2720_v38, %v4962_v37  ;;  %v2722_v35 = vpop.f32.mrb[55].mxu0 }
 0x359   : > { %2798 = vst [vmem:[%s4970_s15 + $0x1a8] sm:$0xff] %v3153_v32  ;;  %v3155_v12 = vadd.f32 %v2722_v35, %v4966_v48 }
 0x35a   : > { %2799 = vst [vmem:[%s4970_s15 + $0x1b0] sm:$0xff] %v3154_v2 }
 0x35b   : > { %2800 = vst [vmem:[%s4970_s15 + $0x1b8] sm:$0xff] %v3155_v12 }
 0x35d   : > { %v2726_v14 = vpop.f32.mrb[56].mxu0 }
 0x35e   : > { %v3156_v17 = vadd.f32 %v2726_v14, %v4962_v37  ;;  %v2728_v13 = vpop.f32.mrb[57].mxu0 }
 0x35f   : > { %v3157_v8 = vadd.f32 %v2728_v13, %v4966_v48  ;;  %v2730_v20 = vpop.f32.mrb[58].mxu0 }
 0x360   : > { %2801 = vst [vmem:[%s4970_s15 + $0x1c0] sm:$0xff] %v3156_v17  ;;  %v3158_v49 = vadd.f32 %v2730_v20, %v4962_v37  ;;  %v2732_v63 = vpop.f32.mrb[59].mxu0 }
 0x361   : > { %2802 = vst [vmem:[%s4970_s15 + $0x1c8] sm:$0xff] %v3157_v8  ;;  %v3159_v4 = vadd.f32 %v2732_v63, %v4966_v48 }
 0x362   : > { %2803 = vst [vmem:[%s4970_s15 + $0x1d0] sm:$0xff] %v3158_v49 }
 0x363   : > { %2804 = vst [vmem:[%s4970_s15 + $0x1d8] sm:$0xff] %v3159_v4 }
 0x365   : > { %v2736_v30 = vpop.f32.mrb[60].mxu0 }
 0x366   : > { %v3160_v1 = vadd.f32 %v2736_v30, %v4962_v37  ;;  %v2738_v33 = vpop.f32.mrb[61].mxu0 }
 0x367   : > { %v3161_v19 = vadd.f32 %v2738_v33, %v4966_v48  ;;  %v2740_v39 = vpop.f32.mrb[62].mxu0 }
 0x368   : > { %2805 = vst [vmem:[%s4970_s15 + $0x1e0] sm:$0xff] %v3160_v1  ;;  %v3162_v56 = vadd.f32 %v2740_v39, %v4962_v37  ;;  %v2742_v9 = vpop.f32.mrb[63].mxu0 }
 0x369   : > { %2806 = vst [vmem:[%s4970_s15 + $0x1e8] sm:$0xff] %v3161_v19  ;;  %v3163_v6 = vadd.f32 %v2742_v9, %v4966_v48 }
 0x36a   : > { %2807 = vst [vmem:[%s4970_s15 + $0x1f0] sm:$0xff] %v3162_v56 }
 0x36b   : > { %2808 = vst [vmem:[%s4970_s15 + $0x1f8] sm:$0xff] %v3163_v6 }
 0x36c   : > { %3897 = shalt.err (!%p3894_p7)
}
 0x36d   : > { %s3898_s12 = scalar_lea.hbm %s5099_s6, 8192  ;;  %s3902_s28 = scalar_lea.hbm %s5153_s5, 32768 }
 0x36e   : > { %p3899_p9 = scmp.ne.s32.totalorder %s5099_s6, %s3898_s12  ;;  %p3903_p5 = scmp.lt.u32.totalorder %s5099_s6, %s5153_s5 }
 0x36f   : > { %p3904_p10 = scmp.lt.u32.totalorder %s3902_s28, %s3898_s12  ;;  %p3906_p1 = scmp.lt.u32.totalorder %s3898_s12, %s5099_s6 }
 0x370   : > { %p3900_p12 = pnand %p3899_p9, %p4114_p6 }
 0x371   : > { %p3905_p11 = por %p3904_p10, %p3903_p5 }
 0x372   : > { %p3901_p0 = pneg %p3900_p12 }
 0x373   : > { %p3907_p2 = por %p3906_p1, %p3905_p11 }
 0x375   : > { %p3908_p4 = pnand %p3907_p2, %p3901_p0 }
 0x377   : > { %3911 = shalt.err (!%p3908_p4)
}
 0x378   : > { %s3964_s30 = smov 256   ;;  %s3965_s23 = smov 16  }
 0x379   : > { %3238 = dma.vmem_to_hbm [thread:$0]  (%p4114_p6), %s5101_s11, 8192, %s5099_s6, %s2810_s22, %s3964_s30, %s3964_s30, %s3965_s23  }
 0x37a PF: > { %p3260_p8 = scmp.ge.s32.totalorder %s3954_s21, 2  ;;  %s2839_s7 = sand.u32 1, %s3942_s18  }
 0x37b   : > { %p5168_p13 = scmp.ne.s32.totalorder %s5158_s25, 0  ;;  %s2840_s8 = scalar_lea.sflag [#allocation4], %s2839_s7 }
 0x37d   : > { %p3252_p3 = pnand %p3260_p8, %p5168_p13 }
 0x37f   : > { %3937 = dma.done.wait (!%p3252_p3), %s2840_s8, 8192  }
 0x380   : > { %3939 = vsyncadd (!%p3252_p3), %s2840_s8, 4294959104  ;;  %p19_p7 = scmp.ge.s32.totalorder %s4101_s16, 6   ;;  %s5169_s18 = smov %s3946_s19 }
 0x381   : > { %s5170_s19 = smov %s3950_s20  ;;  %s5171_s20 = smov %s4110_s27 }
 0x382   : > { %s5172_s21 = smov %s4101_s16  ;;  %21 = sbr.rel (!%p19_p7) target bundleno = 6 (0x6), region = 93 }
 0x389   :  { %2845 = vsyncpa [#allocation3], 1 }
 0x38a   :  { %2847 = vsyncpa [#allocation3 + $0x1], 1 }
 0x38b   :  { %2848 = vsyncpa [#allocation6], 1 }
 0x38c   :  { %2849 = vsyncpa [#allocation4], 1 }
 0x38d   :  { %2851 = vsyncpa [#allocation4 + $0x1], 1 }

</bundles_post_ra>
